<compile_context>
chip_gen: v7x
topology: tpu7x:2x2x1
jax: 0.10.0
libtpu: 0.0.40
codegen_flags: <defaults>
</compile_context>

<pallas_src>
import functools

import jax
import jax.numpy as jnp
from jax import lax
from jax.experimental import pallas as pl
from jax.experimental.pallas import tpu as pltpu


def _round_up(v, m):
    return (v + m - 1) // m * m


# ----------------------------------------------------------------------------
# Kernel factory: per grid step, one channel block of the conv + fc1 partial.
# ----------------------------------------------------------------------------
def _make_kernel(B, XW, SP, BLK_CO):
    def kernel(pm_ref, wc_ref, bc_ref, w1_ref, b1_ref, w2_ref, b2_ref, o_ref,
               ffk_ref, h1_ref):
        k = pl.program_id(0)

        @pl.when(k == 0)
        def _():
            h1_ref[...] = jnp.zeros_like(h1_ref)

        # ---- conv for this channel block: one MXU matmul + bias + ReLU.
        conv = lax.dot_general(wc_ref[...], pm_ref[...],
                               (((1,), (0,)), ((), ())),
                               preferred_element_type=jnp.float32)
        conv = jnp.maximum(conv + bc_ref[...], 0.0)            # (BLK_CO, SS)

        # ---- channel-major flatten of this block's per-image SP windows into
        # (B, BLK_CO*SP).  NOTE: columns of `conv` outside each image's window
        # ("phantom" columns, including any data crossed over the image
        # boundary by the im2col taps) are either never read here or are
        # neutralized by zero rows of w1 — do not consume `conv` elsewhere.
        # These 2*BLK_CO single-sublane stores hide under the next w1 DMA.
        for b in range(B):
            for co in range(BLK_CO):
                ffk_ref[b, co * SP:(co + 1) * SP] = conv[co, b * XW:b * XW + SP]

        # ---- partial fc1: accumulate this K-block's contribution.
        # w1 is stored bf16; upcast so the K=C_out*SP contraction stays f32.
        h1_ref[...] += lax.dot_general(ffk_ref[...],
                                       w1_ref[...].astype(jnp.float32),
                                       (((1,), (0,)), ((), ())),
                                       preferred_element_type=jnp.float32)

        # ---- finalize: ReLU -> fc2 -> output write (lane-padded hidden=128
        # units are exactly zero and have zero w2 rows, so they contribute 0).
        @pl.when(k == pl.num_programs(0) - 1)
        def _():
            h1 = jnp.maximum(h1_ref[...] + b1_ref[...], 0.0)   # (B, HID)
            out = lax.dot_general(h1, w2_ref[...],
                                  (((1,), (0,)), ((), ())),
                                  preferred_element_type=jnp.float32)
            o_ref[...] = (out + b2_ref[...]).astype(o_ref.dtype)

    return kernel


# ----------------------------------------------------------------------------
# One-time weight preparation (outside the per-call path).
# ----------------------------------------------------------------------------
def prepare_params(params, observation_size, *, padding=2):
    w_conv, b_conv, w_fc1, b_fc1, w_fc2, b_fc2 = params
    C_out, C_in, K, _ = w_conv.shape
    hidden = w_fc1.shape[0]
    n_actions = w_fc2.shape[0]
    H, W = observation_size
    P = padding
    Hp, Wp = H + 2 * P, W + 2 * P
    Ho, Wo = Hp - K + 1, Wp - K + 1
    assert w_fc1.shape[1] == C_out * Ho * Wo
    SP = _round_up((Ho - 1) * Wp + Wo, 128)   # per-image flat feature stride
    HID = _round_up(hidden, 128)              # lane-dense hidden (100 -> 128)

    # w_fc1 (hidden, C_out*Ho*Wo) -> (C_out*SP, HID): channel-major rows in the
    # kernel's phantom-padded flat layout (row index = co*SP + ho*Wp + wo).
    # Phantom rows (wo >= Wo, j >= Ho*Wp) and padded hidden columns are zero.
    # Stored bf16 to halve the dominant HBM transfer.
    w1 = w_fc1.reshape(hidden, C_out, Ho, Wo)
    w1 = jnp.pad(w1, ((0, 0), (0, 0), (0, 0), (0, Wp - Wo)))
    w1 = w1.reshape(hidden, C_out, Ho * Wp)
    w1 = jnp.pad(w1, ((0, 0), (0, 0), (0, SP - Ho * Wp)))
    w1 = jnp.transpose(w1, (1, 2, 0)).reshape(C_out * SP, hidden)
    w1 = jnp.pad(w1, ((0, 0), (0, HID - hidden))).astype(jnp.bfloat16)

    wc = w_conv.reshape(C_out, C_in * K * K).astype(jnp.float32)   # (C_out, T)
    bc = b_conv.reshape(C_out, 1).astype(jnp.float32)
    b1 = jnp.pad(b_fc1.reshape(1, hidden), ((0, 0), (0, HID - hidden)))
    w2 = jnp.pad(w_fc2.T, ((0, HID - hidden), (0, 0)))             # (HID, NA)
    b2 = b_fc2.reshape(1, n_actions)
    return (wc, bc, w1, b1, w2, b2)


# ----------------------------------------------------------------------------
# Wrapper-side layout plumbing: normalize + pad + flatten + im2col on a 2 KB
# input, fused into one tiny XLA kernel so the Pallas kernel only sees
# lane-dense operands.
# ----------------------------------------------------------------------------
def _preprocess(x, *, K, P, XW, SS):
    B, C_in, H, W = x.shape
    Hp, Wp = H + 2 * P, W + 2 * P
    # F.normalize(x, dim=[-1,-2]) with eps=1e-12 (zero-pad commutes with it).
    nrm = jnp.sqrt(jnp.sum(x * x, axis=(-1, -2), keepdims=True))
    xn = x / jnp.maximum(nrm, 1e-12)
    xp = jnp.pad(xn, ((0, 0), (0, 0), (P, P), (P, P)))        # (B,C,Hp,Wp)
    xf = xp.reshape(B, C_in, Hp * Wp)
    xf = jnp.pad(xf, ((0, 0), (0, 0), (0, XW - Hp * Wp)))     # one XW slot/img
    xflat = jnp.transpose(xf, (1, 0, 2)).reshape(C_in, B * XW)
    taps = []
    for ci in range(C_in):
        for kh in range(K):
            for kw in range(K):
                base = kh * Wp + kw
                taps.append(xflat[ci, base:base + SS])
    return jnp.stack(taps, axis=0)            # (C_in*K*K, SS) im2col patches


# ----------------------------------------------------------------------------
# Forward pass (single pallas_call, 1-D grid over C_out blocks == fc1 K-blocks).
# ----------------------------------------------------------------------------
def conv_brain_forward(x, prepped, *, kernel_size=4, padding=2, block_channels=8):
    wc, bc, w1, b1, w2, b2 = prepped
    B, C_in, H, W = x.shape
    C_out, T = wc.shape
    K, P = kernel_size, padding
    Hp, Wp = H + 2 * P, W + 2 * P
    HID = w1.shape[1]
    n_actions = w2.shape[1]
    SP = w1.shape[0] // C_out
    assert SP % 128 == 0 and SP >= (Hp - K) * Wp + (Wp - K + 1)
    XW = _round_up(max(Hp * Wp, (K - 1) * Wp + (K - 1) + SP), 128)
    SS = (B - 1) * XW + SP
    BLK_CO = block_channels
    assert C_out % BLK_CO == 0 and BLK_CO % 8 == 0
    NK = C_out // BLK_CO
    BLK_K = BLK_CO * SP          # fc1 contraction block (bf16 block ~0.75 MB)

    pm = _preprocess(x, K=K, P=P, XW=XW, SS=SS)               # (T, SS) f32

    kernel = _make_kernel(B, XW, SP, BLK_CO)

    flops = 2 * C_out * T * SS + 2 * B * C_out * SP * HID + 2 * B * HID * n_actions
    bytes_accessed = (w1.size * w1.dtype.itemsize + pm.size * 4 + wc.size * 4
                      + bc.size * 4 + b1.size * 4 + w2.size * 4 + b2.size * 4
                      + B * n_actions * 4)

    return pl.pallas_call(
        kernel,
        out_shape=jax.ShapeDtypeStruct((B, n_actions), jnp.float32),
        grid_spec=pltpu.PrefetchScalarGridSpec(
            num_scalar_prefetch=0,
            grid=(NK,),
            in_specs=[
                pl.BlockSpec((T, SS), lambda k: (0, 0)),           # im2col (resident)
                pl.BlockSpec((BLK_CO, T), lambda k: (k, 0)),       # conv weight block
                pl.BlockSpec((BLK_CO, 1), lambda k: (k, 0)),       # conv bias block
                pl.BlockSpec((BLK_K, HID), lambda k: (k, 0)),      # fc1 weight block (bf16)
                pl.BlockSpec((1, HID), lambda k: (0, 0)),          # fc1 bias (resident)
                pl.BlockSpec((HID, n_actions), lambda k: (0, 0)),  # fc2 weight (resident)
                pl.BlockSpec((1, n_actions), lambda k: (0, 0)),    # fc2 bias (resident)
            ],
            out_specs=pl.BlockSpec((B, n_actions), lambda k: (0, 0)),
            scratch_shapes=[
                pltpu.VMEM((B, BLK_K), jnp.float32),   # per-block flat features
                pltpu.VMEM((B, HID), jnp.float32),     # fc1 accumulator
            ]),
        compiler_params=pltpu.CompilerParams(
            dimension_semantics=("arbitrary",),        # reduction axis
            vmem_limit_bytes=32 * 1024 * 1024),
        cost_estimate=pl.CostEstimate(flops=flops, transcendentals=0,
                                      bytes_accessed=bytes_accessed),
    )(pm, wc, bc, w1, b1, w2, b2)


# ----------------------------------------------------------------------------
# Pure-JAX reference (mirrors the PyTorch module exactly) for validation.
# ----------------------------------------------------------------------------
def conv_brain_reference(x, params, *, padding=2):
    w_conv, b_conv, w_fc1, b_fc1, w_fc2, b_fc2 = params
    nrm = jnp.sqrt(jnp.sum(x * x, axis=(-1, -2), keepdims=True))
    xn = x / jnp.maximum(nrm, 1e-12)
    y = lax.conv_general_dilated(
        xn, w_conv, window_strides=(1, 1),
        padding=((padding, padding), (padding, padding)),
        dimension_numbers=("NCHW", "OIHW", "NCHW"))
    y = jnp.maximum(y + b_conv.reshape(1, -1, 1, 1), 0.0)
    f = y.reshape(y.shape[0], -1)
    h = jnp.maximum(f @ w_fc1.T + b_fc1, 0.0)
    return h @ w_fc2.T + b_fc2


def init_params(key, observation_size, n_actions, in_channels=1,
                hidden_channels=32, kernel_size=4, hidden_size=100):
    H, W = observation_size
    Ho, Wo = H + 1, W + 1  # with kernel=4, padding=2
    in_features = Ho * Wo * hidden_channels
    ks = jax.random.split(key, 6)

    def uni(k, shape, bound):
        return jax.random.uniform(k, shape, jnp.float32, -bound, bound)

    kc = 1.0 / jnp.sqrt(in_channels * kernel_size * kernel_size)
    k1 = 1.0 / jnp.sqrt(in_features)
    k2 = 1.0 / jnp.sqrt(hidden_size)
    w_conv = uni(ks[0], (hidden_channels, in_channels, kernel_size, kernel_size), kc)
    b_conv = uni(ks[1], (hidden_channels,), kc)
    w_fc1 = uni(ks[2], (hidden_size, in_features), k1)
    b_fc1 = uni(ks[3], (hidden_size,), k1)
    w_fc2 = uni(ks[4], (n_actions, hidden_size), k2)
    b_fc2 = uni(ks[5], (n_actions,), k2)
    return (w_conv, b_conv, w_fc1, b_fc1, w_fc2, b_fc2)


if __name__ == "__main__":
    observation_size = (16, 16)
    n_actions = 4
    batch = 2
    in_channels = 1

    key = jax.random.PRNGKey(0)
    kx, kp = jax.random.split(key)
    params = init_params(kp, observation_size, n_actions, in_channels=in_channels)
    x = jax.random.normal(kx, (batch, in_channels, *observation_size), jnp.float32)

    # Weight re-layout + bf16 cast happen once, outside the per-call path.
    prepped = prepare_params(params, observation_size, padding=2)

    fwd = jax.jit(functools.partial(conv_brain_forward, kernel_size=4, padding=2))
    out = jax.block_until_ready(fwd(x, prepped))
    assert out.shape == (batch, n_actions)

    # Tight check: reference using the SAME (intentional, review-requested) bf16
    # rounding of w_fc1, so this isolates kernel math (contraction stays f32).
    w_conv, b_conv, w_fc1, b_fc1, w_fc2, b_fc2 = params
    w_fc1_q = w_fc1.astype(jnp.bfloat16).astype(jnp.float32)
    ref_q = conv_brain_reference(
        x, (w_conv, b_conv, w_fc1_q, b_fc1, w_fc2, b_fc2), padding=2)
    assert jnp.allclose(out, ref_q, rtol=2e-4, atol=2e-4), (out, ref_q)

    # Loose semantic check against the exact f32 PyTorch-equivalent module
    # (difference here is only the bf16 weight-storage quantization).
    ref = conv_brain_reference(x, params, padding=2)
    assert jnp.allclose(out, ref, rtol=5e-3, atol=5e-3), (out, ref)

    print("KERNEL_OK")
</pallas_src>

<mosaic_0001>
module attributes {stable_mosaic.version = 11 : i64} {
  func.func @kernel(%arg0: i32, %arg1: memref<16x896xf32, #tpu.memory_space<vmem>>, %arg2: memref<8x16xf32, #tpu.memory_space<vmem>>, %arg3: memref<8x1xf32, #tpu.memory_space<vmem>>, %arg4: memref<3072x128xbf16, #tpu.memory_space<vmem>>, %arg5: memref<1x128xf32, #tpu.memory_space<vmem>>, %arg6: memref<128x4xf32, #tpu.memory_space<vmem>>, %arg7: memref<1x4xf32, #tpu.memory_space<vmem>>, %arg8: memref<2x4xf32, #tpu.memory_space<vmem>>, %arg9: memref<2x3072xf32, #tpu.memory_space<vmem>>, %arg10: memref<2x128xf32, #tpu.memory_space<vmem>>) attributes {dimension_semantics = [#tpu.dimension_semantics<arbitrary>], iteration_bounds = array<i64: 4>, scalar_prefetch = 0 : i64, scratch_operands = 2 : i64, tpu.core_type = #tpu.core_type<tc>, window_params = [{pipeline_mode = #tpu.pipeline_mode<synchronous>, transform_indices = @transform_0, window_bounds = array<i64: 16, 896>}, {transform_indices = @transform_1, window_bounds = array<i64: 8, 16>}, {transform_indices = @transform_2, window_bounds = array<i64: 8, 1>}, {transform_indices = @transform_3, window_bounds = array<i64: 3072, 128>}, {pipeline_mode = #tpu.pipeline_mode<synchronous>, transform_indices = @transform_4, window_bounds = array<i64: 1, 128>}, {pipeline_mode = #tpu.pipeline_mode<synchronous>, transform_indices = @transform_5, window_bounds = array<i64: 128, 4>}, {pipeline_mode = #tpu.pipeline_mode<synchronous>, transform_indices = @transform_6, window_bounds = array<i64: 1, 4>}, {pipeline_mode = #tpu.pipeline_mode<synchronous>, transform_indices = @transform_7, window_bounds = array<i64: 2, 4>}]} {
    %c0_i32 = arith.constant 0 : i32
    %0 = arith.cmpi eq, %arg0, %c0_i32 : i32
    %1 = arith.extui %0 : i1 to i32
    %c0_i32_0 = arith.constant 0 : i32
    %2 = arith.cmpi ne, %1, %c0_i32_0 : i32
    scf.if %2 {
      %cst_41 = arith.constant 0.000000e+00 : f32
      %101 = vector.broadcast %cst_41 : f32 to vector<2x128xf32>
      %c0_42 = arith.constant 0 : index
      %c0_43 = arith.constant 0 : index
      %102 = vector.load %arg10[%c0_42, %c0_43] : memref<2x128xf32, #tpu.memory_space<vmem>>, vector<2x128xf32>
      tpu.vector_store %arg10[%c0_42, %c0_43], %101 {strides = array<i32>} : memref<2x128xf32, #tpu.memory_space<vmem>>, vector<2x128xf32>,
    } else {
    }
    %c0 = arith.constant 0 : index
    %c0_1 = arith.constant 0 : index
    %3 = vector.load %arg2[%c0, %c0_1] : memref<8x16xf32, #tpu.memory_space<vmem>>, vector<8x16xf32>
    %c0_2 = arith.constant 0 : index
    %c0_3 = arith.constant 0 : index
    %4 = vector.load %arg1[%c0_2, %c0_3] : memref<16x896xf32, #tpu.memory_space<vmem>>, vector<16x896xf32>
    %cst = arith.constant dense<0.000000e+00> : vector<8x896xf32>
    %5 = tpu.matmul %3, %4, %cst {dimension_numbers = #tpu.dot_dimension_numbers<[1], [0], [0], [1], [0, 0, 1, 1], [], []>} : vector<8x16xf32>, vector<16x896xf32>, vector<8x896xf32> -> vector<8x896xf32>
    %c0_4 = arith.constant 0 : index
    %c0_5 = arith.constant 0 : index
    %6 = vector.load %arg3[%c0_4, %c0_5] : memref<8x1xf32, #tpu.memory_space<vmem>>, vector<8x1xf32>
    %7 = vector.broadcast %6 : vector<8x1xf32> to vector<8x896xf32>
    %8 = arith.addf %5, %7 : vector<8x896xf32>
    %cst_6 = arith.constant 0.000000e+00 : f32
    %9 = vector.broadcast %cst_6 : f32 to vector<8x896xf32>
    %10 = arith.maximumf %8, %9 : vector<8x896xf32>
    %11 = vector.extract_strided_slice %10 {offsets = [0, 0], sizes = [1, 384], strides = [1, 1]} : vector<8x896xf32> to vector<1x384xf32>
    %12 = vector.shape_cast %11 : vector<1x384xf32> to vector<384xf32>
    %c0_7 = arith.constant 0 : index
    %c0_8 = arith.constant 0 : index
    %13 = vector.load %arg9[%c0_7, %c0_8] : memref<2x3072xf32, #tpu.memory_space<vmem>>, vector<1x384xf32>
    %14 = vector.shape_cast %13 : vector<1x384xf32> to vector<384xf32>
    %15 = vector.shape_cast %12 : vector<384xf32> to vector<1x384xf32>
    tpu.vector_store %arg9[%c0_7, %c0_8], %15 {strides = array<i32>} : memref<2x3072xf32, #tpu.memory_space<vmem>>, vector<1x384xf32>,
    %16 = vector.extract_strided_slice %10 {offsets = [1, 0], sizes = [1, 384], strides = [1, 1]} : vector<8x896xf32> to vector<1x384xf32>
    %17 = vector.shape_cast %16 : vector<1x384xf32> to vector<384xf32>
    %c0_9 = arith.constant 0 : index
    %c384 = arith.constant 384 : index
    %18 = vector.load %arg9[%c0_9, %c384] : memref<2x3072xf32, #tpu.memory_space<vmem>>, vector<1x384xf32>
    %19 = vector.shape_cast %18 : vector<1x384xf32> to vector<384xf32>
    %20 = vector.shape_cast %17 : vector<384xf32> to vector<1x384xf32>
    tpu.vector_store %arg9[%c0_9, %c384], %20 {strides = array<i32>} : memref<2x3072xf32, #tpu.memory_space<vmem>>, vector<1x384xf32>,
    %21 = vector.extract_strided_slice %10 {offsets = [2, 0], sizes = [1, 384], strides = [1, 1]} : vector<8x896xf32> to vector<1x384xf32>
    %22 = vector.shape_cast %21 : vector<1x384xf32> to vector<384xf32>
    %c0_10 = arith.constant 0 : index
    %c768 = arith.constant 768 : index
    %23 = vector.load %arg9[%c0_10, %c768] : memref<2x3072xf32, #tpu.memory_space<vmem>>, vector<1x384xf32>
    %24 = vector.shape_cast %23 : vector<1x384xf32> to vector<384xf32>
    %25 = vector.shape_cast %22 : vector<384xf32> to vector<1x384xf32>
    tpu.vector_store %arg9[%c0_10, %c768], %25 {strides = array<i32>} : memref<2x3072xf32, #tpu.memory_space<vmem>>, vector<1x384xf32>,
    %26 = vector.extract_strided_slice %10 {offsets = [3, 0], sizes = [1, 384], strides = [1, 1]} : vector<8x896xf32> to vector<1x384xf32>
    %27 = vector.shape_cast %26 : vector<1x384xf32> to vector<384xf32>
    %c0_11 = arith.constant 0 : index
    %c1152 = arith.constant 1152 : index
    %28 = vector.load %arg9[%c0_11, %c1152] : memref<2x3072xf32, #tpu.memory_space<vmem>>, vector<1x384xf32>
    %29 = vector.shape_cast %28 : vector<1x384xf32> to vector<384xf32>
    %30 = vector.shape_cast %27 : vector<384xf32> to vector<1x384xf32>
    tpu.vector_store %arg9[%c0_11, %c1152], %30 {strides = array<i32>} : memref<2x3072xf32, #tpu.memory_space<vmem>>, vector<1x384xf32>,
    %31 = vector.extract_strided_slice %10 {offsets = [4, 0], sizes = [1, 384], strides = [1, 1]} : vector<8x896xf32> to vector<1x384xf32>
    %32 = vector.shape_cast %31 : vector<1x384xf32> to vector<384xf32>
    %c0_12 = arith.constant 0 : index
    %c1536 = arith.constant 1536 : index
    %33 = vector.load %arg9[%c0_12, %c1536] : memref<2x3072xf32, #tpu.memory_space<vmem>>, vector<1x384xf32>
    %34 = vector.shape_cast %33 : vector<1x384xf32> to vector<384xf32>
    %35 = vector.shape_cast %32 : vector<384xf32> to vector<1x384xf32>
    tpu.vector_store %arg9[%c0_12, %c1536], %35 {strides = array<i32>} : memref<2x3072xf32, #tpu.memory_space<vmem>>, vector<1x384xf32>,
    %36 = vector.extract_strided_slice %10 {offsets = [5, 0], sizes = [1, 384], strides = [1, 1]} : vector<8x896xf32> to vector<1x384xf32>
    %37 = vector.shape_cast %36 : vector<1x384xf32> to vector<384xf32>
    %c0_13 = arith.constant 0 : index
    %c1920 = arith.constant 1920 : index
    %38 = vector.load %arg9[%c0_13, %c1920] : memref<2x3072xf32, #tpu.memory_space<vmem>>, vector<1x384xf32>
    %39 = vector.shape_cast %38 : vector<1x384xf32> to vector<384xf32>
    %40 = vector.shape_cast %37 : vector<384xf32> to vector<1x384xf32>
    tpu.vector_store %arg9[%c0_13, %c1920], %40 {strides = array<i32>} : memref<2x3072xf32, #tpu.memory_space<vmem>>, vector<1x384xf32>,
    %41 = vector.extract_strided_slice %10 {offsets = [6, 0], sizes = [1, 384], strides = [1, 1]} : vector<8x896xf32> to vector<1x384xf32>
    %42 = vector.shape_cast %41 : vector<1x384xf32> to vector<384xf32>
    %c0_14 = arith.constant 0 : index
    %c2304 = arith.constant 2304 : index
    %43 = vector.load %arg9[%c0_14, %c2304] : memref<2x3072xf32, #tpu.memory_space<vmem>>, vector<1x384xf32>
    %44 = vector.shape_cast %43 : vector<1x384xf32> to vector<384xf32>
    %45 = vector.shape_cast %42 : vector<384xf32> to vector<1x384xf32>
    tpu.vector_store %arg9[%c0_14, %c2304], %45 {strides = array<i32>} : memref<2x3072xf32, #tpu.memory_space<vmem>>, vector<1x384xf32>,
    %46 = vector.extract_strided_slice %10 {offsets = [7, 0], sizes = [1, 384], strides = [1, 1]} : vector<8x896xf32> to vector<1x384xf32>
    %47 = vector.shape_cast %46 : vector<1x384xf32> to vector<384xf32>
    %c0_15 = arith.constant 0 : index
    %c2688 = arith.constant 2688 : index
    %48 = vector.load %arg9[%c0_15, %c2688] : memref<2x3072xf32, #tpu.memory_space<vmem>>, vector<1x384xf32>
    %49 = vector.shape_cast %48 : vector<1x384xf32> to vector<384xf32>
    %50 = vector.shape_cast %47 : vector<384xf32> to vector<1x384xf32>
    tpu.vector_store %arg9[%c0_15, %c2688], %50 {strides = array<i32>} : memref<2x3072xf32, #tpu.memory_space<vmem>>, vector<1x384xf32>,
    %51 = vector.extract_strided_slice %10 {offsets = [0, 512], sizes = [1, 384], strides = [1, 1]} : vector<8x896xf32> to vector<1x384xf32>
    %52 = vector.shape_cast %51 : vector<1x384xf32> to vector<384xf32>
    %c1 = arith.constant 1 : index
    %c0_16 = arith.constant 0 : index
    %53 = vector.load %arg9[%c1, %c0_16] : memref<2x3072xf32, #tpu.memory_space<vmem>>, vector<1x384xf32>
    %54 = vector.shape_cast %53 : vector<1x384xf32> to vector<384xf32>
    %55 = vector.shape_cast %52 : vector<384xf32> to vector<1x384xf32>
    tpu.vector_store %arg9[%c1, %c0_16], %55 {strides = array<i32>} : memref<2x3072xf32, #tpu.memory_space<vmem>>, vector<1x384xf32>,
    %56 = vector.extract_strided_slice %10 {offsets = [1, 512], sizes = [1, 384], strides = [1, 1]} : vector<8x896xf32> to vector<1x384xf32>
    %57 = vector.shape_cast %56 : vector<1x384xf32> to vector<384xf32>
    %c1_17 = arith.constant 1 : index
    %c384_18 = arith.constant 384 : index
    %58 = vector.load %arg9[%c1_17, %c384_18] : memref<2x3072xf32, #tpu.memory_space<vmem>>, vector<1x384xf32>
    %59 = vector.shape_cast %58 : vector<1x384xf32> to vector<384xf32>
    %60 = vector.shape_cast %57 : vector<384xf32> to vector<1x384xf32>
    tpu.vector_store %arg9[%c1_17, %c384_18], %60 {strides = array<i32>} : memref<2x3072xf32, #tpu.memory_space<vmem>>, vector<1x384xf32>,
    %61 = vector.extract_strided_slice %10 {offsets = [2, 512], sizes = [1, 384], strides = [1, 1]} : vector<8x896xf32> to vector<1x384xf32>
    %62 = vector.shape_cast %61 : vector<1x384xf32> to vector<384xf32>
    %c1_19 = arith.constant 1 : index
    %c768_20 = arith.constant 768 : index
    %63 = vector.load %arg9[%c1_19, %c768_20] : memref<2x3072xf32, #tpu.memory_space<vmem>>, vector<1x384xf32>
    %64 = vector.shape_cast %63 : vector<1x384xf32> to vector<384xf32>
    %65 = vector.shape_cast %62 : vector<384xf32> to vector<1x384xf32>
    tpu.vector_store %arg9[%c1_19, %c768_20], %65 {strides = array<i32>} : memref<2x3072xf32, #tpu.memory_space<vmem>>, vector<1x384xf32>,
    %66 = vector.extract_strided_slice %10 {offsets = [3, 512], sizes = [1, 384], strides = [1, 1]} : vector<8x896xf32> to vector<1x384xf32>
    %67 = vector.shape_cast %66 : vector<1x384xf32> to vector<384xf32>
    %c1_21 = arith.constant 1 : index
    %c1152_22 = arith.constant 1152 : index
    %68 = vector.load %arg9[%c1_21, %c1152_22] : memref<2x3072xf32, #tpu.memory_space<vmem>>, vector<1x384xf32>
    %69 = vector.shape_cast %68 : vector<1x384xf32> to vector<384xf32>
    %70 = vector.shape_cast %67 : vector<384xf32> to vector<1x384xf32>
    tpu.vector_store %arg9[%c1_21, %c1152_22], %70 {strides = array<i32>} : memref<2x3072xf32, #tpu.memory_space<vmem>>, vector<1x384xf32>,
    %71 = vector.extract_strided_slice %10 {offsets = [4, 512], sizes = [1, 384], strides = [1, 1]} : vector<8x896xf32> to vector<1x384xf32>
    %72 = vector.shape_cast %71 : vector<1x384xf32> to vector<384xf32>
    %c1_23 = arith.constant 1 : index
    %c1536_24 = arith.constant 1536 : index
    %73 = vector.load %arg9[%c1_23, %c1536_24] : memref<2x3072xf32, #tpu.memory_space<vmem>>, vector<1x384xf32>
    %74 = vector.shape_cast %73 : vector<1x384xf32> to vector<384xf32>
    %75 = vector.shape_cast %72 : vector<384xf32> to vector<1x384xf32>
    tpu.vector_store %arg9[%c1_23, %c1536_24], %75 {strides = array<i32>} : memref<2x3072xf32, #tpu.memory_space<vmem>>, vector<1x384xf32>,
    %76 = vector.extract_strided_slice %10 {offsets = [5, 512], sizes = [1, 384], strides = [1, 1]} : vector<8x896xf32> to vector<1x384xf32>
    %77 = vector.shape_cast %76 : vector<1x384xf32> to vector<384xf32>
    %c1_25 = arith.constant 1 : index
    %c1920_26 = arith.constant 1920 : index
    %78 = vector.load %arg9[%c1_25, %c1920_26] : memref<2x3072xf32, #tpu.memory_space<vmem>>, vector<1x384xf32>
    %79 = vector.shape_cast %78 : vector<1x384xf32> to vector<384xf32>
    %80 = vector.shape_cast %77 : vector<384xf32> to vector<1x384xf32>
    tpu.vector_store %arg9[%c1_25, %c1920_26], %80 {strides = array<i32>} : memref<2x3072xf32, #tpu.memory_space<vmem>>, vector<1x384xf32>,
    %81 = vector.extract_strided_slice %10 {offsets = [6, 512], sizes = [1, 384], strides = [1, 1]} : vector<8x896xf32> to vector<1x384xf32>
    %82 = vector.shape_cast %81 : vector<1x384xf32> to vector<384xf32>
    %c1_27 = arith.constant 1 : index
    %c2304_28 = arith.constant 2304 : index
    %83 = vector.load %arg9[%c1_27, %c2304_28] : memref<2x3072xf32, #tpu.memory_space<vmem>>, vector<1x384xf32>
    %84 = vector.shape_cast %83 : vector<1x384xf32> to vector<384xf32>
    %85 = vector.shape_cast %82 : vector<384xf32> to vector<1x384xf32>
    tpu.vector_store %arg9[%c1_27, %c2304_28], %85 {strides = array<i32>} : memref<2x3072xf32, #tpu.memory_space<vmem>>, vector<1x384xf32>,
    %86 = vector.extract_strided_slice %10 {offsets = [7, 512], sizes = [1, 384], strides = [1, 1]} : vector<8x896xf32> to vector<1x384xf32>
    %87 = vector.shape_cast %86 : vector<1x384xf32> to vector<384xf32>
    %c1_29 = arith.constant 1 : index
    %c2688_30 = arith.constant 2688 : index
    %88 = vector.load %arg9[%c1_29, %c2688_30] : memref<2x3072xf32, #tpu.memory_space<vmem>>, vector<1x384xf32>
    %89 = vector.shape_cast %88 : vector<1x384xf32> to vector<384xf32>
    %90 = vector.shape_cast %87 : vector<384xf32> to vector<1x384xf32>
    tpu.vector_store %arg9[%c1_29, %c2688_30], %90 {strides = array<i32>} : memref<2x3072xf32, #tpu.memory_space<vmem>>, vector<1x384xf32>,
    %c0_31 = arith.constant 0 : index
    %c0_32 = arith.constant 0 : index
    %91 = vector.load %arg10[%c0_31, %c0_32] : memref<2x128xf32, #tpu.memory_space<vmem>>, vector<2x128xf32>
    %c0_33 = arith.constant 0 : index
    %c0_34 = arith.constant 0 : index
    %92 = vector.load %arg9[%c0_33, %c0_34] : memref<2x3072xf32, #tpu.memory_space<vmem>>, vector<2x3072xf32>
    %c0_35 = arith.constant 0 : index
    %c0_36 = arith.constant 0 : index
    %93 = vector.load %arg4[%c0_35, %c0_36] : memref<3072x128xbf16, #tpu.memory_space<vmem>>, vector<3072x128xbf16>
    %94 = arith.extf %93 : vector<3072x128xbf16> to vector<3072x128xf32>
    %cst_37 = arith.constant dense<0.000000e+00> : vector<2x128xf32>
    %95 = tpu.matmul %92, %94, %cst_37 {dimension_numbers = #tpu.dot_dimension_numbers<[1], [0], [0], [1], [0, 0, 1, 1], [], []>} : vector<2x3072xf32>, vector<3072x128xf32>, vector<2x128xf32> -> vector<2x128xf32>
    %96 = arith.addf %91, %95 : vector<2x128xf32>
    %c0_38 = arith.constant 0 : index
    %c0_39 = arith.constant 0 : index
    %97 = vector.load %arg10[%c0_38, %c0_39] : memref<2x128xf32, #tpu.memory_space<vmem>>, vector<2x128xf32>
    tpu.vector_store %arg10[%c0_38, %c0_39], %96 {strides = array<i32>} : memref<2x128xf32, #tpu.memory_space<vmem>>, vector<2x128xf32>,
    %c3_i32 = arith.constant 3 : i32
    %98 = arith.cmpi eq, %arg0, %c3_i32 : i32
    %99 = arith.extui %98 : i1 to i32
    %c0_i32_40 = arith.constant 0 : i32
    %100 = arith.cmpi ne, %99, %c0_i32_40 : i32
    scf.if %100 {
      %c0_41 = arith.constant 0 : index
      %c0_42 = arith.constant 0 : index
      %101 = vector.load %arg10[%c0_41, %c0_42] : memref<2x128xf32, #tpu.memory_space<vmem>>, vector<2x128xf32>
      %c0_43 = arith.constant 0 : index
      %c0_44 = arith.constant 0 : index
      %102 = vector.load %arg5[%c0_43, %c0_44] : memref<1x128xf32, #tpu.memory_space<vmem>>, vector<1x128xf32>
      %103 = vector.broadcast %102 : vector<1x128xf32> to vector<2x128xf32>
      %104 = arith.addf %101, %103 : vector<2x128xf32>
      %cst_45 = arith.constant 0.000000e+00 : f32
      %105 = vector.broadcast %cst_45 : f32 to vector<2x128xf32>
      %106 = arith.maximumf %104, %105 : vector<2x128xf32>
      %c0_46 = arith.constant 0 : index
      %c0_47 = arith.constant 0 : index
      %107 = vector.load %arg6[%c0_46, %c0_47] : memref<128x4xf32, #tpu.memory_space<vmem>>, vector<128x4xf32>
      %cst_48 = arith.constant dense<0.000000e+00> : vector<2x4xf32>
      %108 = tpu.matmul %106, %107, %cst_48 {dimension_numbers = #tpu.dot_dimension_numbers<[1], [0], [0], [1], [0, 0, 1, 1], [], []>} : vector<2x128xf32>, vector<128x4xf32>, vector<2x4xf32> -> vector<2x4xf32>
      %c0_49 = arith.constant 0 : index
      %c0_50 = arith.constant 0 : index
      %109 = vector.load %arg7[%c0_49, %c0_50] : memref<1x4xf32, #tpu.memory_space<vmem>>, vector<1x4xf32>
      %110 = vector.broadcast %109 : vector<1x4xf32> to vector<2x4xf32>
      %111 = arith.addf %108, %110 : vector<2x4xf32>
      %c0_51 = arith.constant 0 : index
      %c0_52 = arith.constant 0 : index
      %112 = vector.load %arg8[%c0_51, %c0_52] : memref<2x4xf32, #tpu.memory_space<vmem>>, vector<2x4xf32>
      tpu.vector_store %arg8[%c0_51, %c0_52], %111 {strides = array<i32>} : memref<2x4xf32, #tpu.memory_space<vmem>>, vector<2x4xf32>,
    } else {
    }
    return
  }
  func.func @transform_0(%arg0: i32) -> (i32, i32) {
    %c0_i32 = arith.constant 0 : i32
    %c0_i32_0 = arith.constant 0 : i32
    %c0_i32_1 = arith.constant 0 : i32
    return %c0_i32, %c0_i32_0 : i32, i32
  }
  func.func @transform_1(%arg0: i32) -> (i32, i32) {
    %c0_i32 = arith.constant 0 : i32
    %c0_i32_0 = arith.constant 0 : i32
    return %arg0, %c0_i32 : i32, i32
  }
  func.func @transform_2(%arg0: i32) -> (i32, i32) {
    %c0_i32 = arith.constant 0 : i32
    %c0_i32_0 = arith.constant 0 : i32
    return %arg0, %c0_i32 : i32, i32
  }
  func.func @transform_3(%arg0: i32) -> (i32, i32) {
    %c0_i32 = arith.constant 0 : i32
    %c0_i32_0 = arith.constant 0 : i32
    return %arg0, %c0_i32 : i32, i32
  }
  func.func @transform_4(%arg0: i32) -> (i32, i32) {
    %c0_i32 = arith.constant 0 : i32
    %c0_i32_0 = arith.constant 0 : i32
    %c0_i32_1 = arith.constant 0 : i32
    return %c0_i32, %c0_i32_0 : i32, i32
  }
  func.func @transform_5(%arg0: i32) -> (i32, i32) {
    %c0_i32 = arith.constant 0 : i32
    %c0_i32_0 = arith.constant 0 : i32
    %c0_i32_1 = arith.constant 0 : i32
    return %c0_i32, %c0_i32_0 : i32, i32
  }
  func.func @transform_6(%arg0: i32) -> (i32, i32) {
    %c0_i32 = arith.constant 0 : i32
    %c0_i32_0 = arith.constant 0 : i32
    %c0_i32_1 = arith.constant 0 : i32
    return %c0_i32, %c0_i32_0 : i32, i32
  }
  func.func @transform_7(%arg0: i32) -> (i32, i32) {
    %c0_i32 = arith.constant 0 : i32
    %c0_i32_0 = arith.constant 0 : i32
    %c0_i32_1 = arith.constant 0 : i32
    return %c0_i32, %c0_i32_0 : i32, i32
  }
}

</mosaic_0001>

<bundles_post_ra>
// kernel: conv_brain_forward.1
= control target key start
LH: loop header
LB: loop body
LE: loop exit
PB: predicated region body
PF: predicated region fallthrough
CT: control target
= control target key end

     0   :  { %12 = vsyncpa [#allocation5], 0  ;;  %s5611_s0 = inlined_call_operand.vmem [shape: f32[16,896], index: 0, kind: input, shape index: {}]   ;;  %s5612_s1 = inlined_call_operand.vmem [shape: f32[32,16], index: 1, kind: input, shape index: {}]   ;;  %s5613_s2 = inlined_call_operand.vmem [shape: f32[32,1], index: 2, kind: input, shape index: {}]   ;;  %s5614_s3 = inlined_call_operand.hbm [shape: bf16[12288,128], index: 3, kind: input, shape index: {}]   ;;  %s5615_s4 = inlined_call_operand.hbm [shape: f32[1,128], index: 4, kind: input, shape index: {}]   ;;  %s5616_s5 = inlined_call_operand.vmem [shape: f32[128,4], index: 5, kind: input, shape index: {}]   ;;  %s5617_s6 = inlined_call_operand.hbm [shape: f32[1,4], index: 6, kind: input, shape index: {}]   ;;  %s5618_s7 = inlined_call_operand.hbm [shape: f32[2,4], index: 7, kind: output, shape index: {}]  }
   0x1   :  { %14 = vsyncpa [#allocation5 + $0x1], 0 }
   0x2   :  { %15 = vsyncpa [#allocation8], 0 }
   0x3   :  { %16 = vsyncpa [#allocation6], 0  ;;  %s5000_s24 = smov 0   ;;  %s5002_s25 = smov 0  }
   0x4   :  { %s5004_s26 = smov 0   ;;  %s5006_s27 = smov 0  }
   0x5 LB: > { %s5019_s28 = sadd.s32 4294967295, %s4942_s27   ;;  %s5022_s29 = sadd.s32 1, %s4942_s27   ;;  %s4942_s27 = sphi %s5006_s27, %s5639_s27   ;;  %s4938_s26 = sphi %s5004_s26, %s5638_s26   ;;  %s4934_s25 = sphi %s5002_s25, %s5637_s25   ;;  %s4930_s24 = sphi %s5000_s24, %s5636_s24  }
   0x6   : > { %s99_s30 = ssub.s32 %s4942_s27, %s5022_s29  ;;  %s102_s8 = sadd.s32 1, %s4938_s26 }
   0x7   : > { %p100_p0 = scmp.eq.s32.totalorder %s99_s30, 0  ;;  %p109_p1 = scmp.ne.s32.totalorder %s4938_s26, %s4934_s25 }
   0x8   : > { %p110_p2 = scmp.eq.s32.totalorder %s4942_s27, 0  ;;  %p115_p3 = scmp.ne.s32.totalorder %s4934_s25, %s4930_s24 }
   0x9   : > { %s5032_s9 = scalar_select %p100_p0, %s4938_s26, %s102_s8  }
   0xa   : > { %p5034_p4 = por %p110_p2, %p109_p1  ;;  %p5619_p5 = scmp.eq.s32.totalorder %s5019_s28, 0 }
   0xb   : > { %p2813_p6 = scmp.ge.s32.totalorder %s4942_s27, 1  ;;  %p210_p7 = scmp.lt.s32.totalorder %s4942_s27, 5 }
   0xc   : > { %p5043_p8 = por %p5619_p5, %p115_p3  ;;  %s4944_s13 = smov [#allocation7]  }
   0xd   : > { %p5048_p10 = pnand %p2813_p6, %p210_p7  ;;  %s226_s14 = sshll.u32 %s4944_s13, 4  ;;  %s227_s14 = int_to_ptr.vmem [resolvable:$true] %s226_s14 }
   0xe   : > { %s5624_s11 = scalar_select %p5043_p8, 1, 0 }
   0xf   : > { %s5625_s12 = scalar_select %p5048_p10, 1, 0 }
  0x10   : > { %p4716_p11 = pneg %p5048_p10  ;;  %p4729_p12 = scmp.lt.s32.totalorder %s4942_s27, 4 }
  0x11   : > { %s4945_s16 = smov [#allocation9]   ;;  %s265_s19 = sand.u32 1, %s4938_s26  }
  0x12   : > { %p5057_p13 = pnand %p4716_p11, %p5619_p5  ;;  %s240_s17 = sshll.u32 %s4945_s16, 4  ;;  %s5067_s17 = int_to_ptr.vmem [resolvable:$true] %s240_s17 }
  0x13   : > { %p5063_p0 = pnand %p4729_p12, %p5034_p4  ;;  %s4788_s22 = scalar_lea.hbm %s5615_s4, 16 }
  0x14   : > { %p4789_p1 = scmp.ne.s32.totalorder %s5615_s4, %s4788_s22  ;;  %p4790_p2 = pneg %p5057_p13 }
  0x15   : > { %s5627_s18 = scalar_select %p5063_p0, 1, 0 }
  0x16   : > { %p4791_p3 = pnand %p4790_p2, %p4789_p1  ;;  %p4795_p6 = scmp.lt.u32.totalorder %s4788_s22, %s5615_s4 }
  0x18   : > { %p4792_p4 = pneg %p4791_p3 }
  0x1a   : > { %p4797_p7 = pnand %p4795_p6, %p4792_p4 }
  0x1c   : > { %4800 = shalt.err (!%p4797_p7)
}
  0x1d   : > { %s4801_s10 = scalar_lea.vmem %s227_s14, 16  ;;  %s4808_s13 = scalar_lea.vmem %s227_s14, 32 }
  0x1e   : > { %p4802_p11 = scmp.ne.s32.totalorder %s227_s14, %s4801_s10  ;;  %p4809_p5 = scmp.lt.s32.totalorder %s227_s14, %s227_s14 }
  0x1f   : > { %p4810_p8 = scmp.lt.s32.totalorder %s4808_s13, %s4801_s10 }
  0x20   : > { %p4804_p12 = pnand %p4802_p11, %p4790_p2 }
  0x21   : > { %p4811_p10 = por %p4810_p8, %p4809_p5 }
  0x22   : > { %p4805_p9 = pneg %p4804_p12 }
  0x24   : > { %p4812_p0 = pnand %p4811_p10, %p4805_p9 }
  0x26   : > { %4815 = shalt.err (!%p4812_p0)
}
  0x27   : > { %4719 = dma.hbm_to_vmem [thread:$0]  (!%p5057_p13), %s5615_s4, 16, %s227_s14, [#allocation8]  }
  0x28   : > { %s4816_s23 = scalar_lea.hbm %s5617_s6, 16 }
  0x29   : > { %p4817_p1 = scmp.ne.s32.totalorder %s5617_s6, %s4816_s23  ;;  %p4823_p9 = scmp.lt.u32.totalorder %s4816_s23, %s5617_s6 }
  0x2b   : > { %p4819_p5 = pnand %p4817_p1, %p4790_p2 }
  0x2d   : > { %p4820_p8 = pneg %p4819_p5 }
  0x2f   : > { %p4825_p10 = pnand %p4823_p9, %p4820_p8 }
  0x31   : > { %4828 = shalt.err (!%p4825_p10)
}
  0x32   : > { %s4829_s14 = scalar_lea.vmem %s5067_s17, 16  ;;  %s4836_s13 = scalar_lea.vmem %s5067_s17, 32 }
  0x33   : > { %p4830_p0 = scmp.ne.s32.totalorder %s5067_s17, %s4829_s14  ;;  %p4837_p6 = scmp.lt.s32.totalorder %s5067_s17, %s5067_s17 }
  0x34   : > { %p4838_p7 = scmp.lt.s32.totalorder %s4836_s13, %s4829_s14 }
  0x35   : > { %p4832_p3 = pnand %p4830_p0, %p4790_p2 }
  0x36   : > { %p4839_p11 = por %p4838_p7, %p4837_p6 }
  0x37   : > { %p4833_p4 = pneg %p4832_p3 }
  0x39   : > { %p4840_p12 = pnand %p4839_p11, %p4833_p4 }
  0x3b   : > { %4843 = shalt.err (!%p4840_p12)
}
  0x3c   : > { %4722 = dma.hbm_to_vmem [thread:$0]  (!%p5057_p13), %s5617_s6, 16, %s5067_s17, [#allocation8]  }
  0x3d   : > { %s4700_s21 = smul.u32 1536, %s265_s19  ;;  %s5130_s10 = scalar_lea.sflag [#allocation5], %s265_s19 }
  0x3e   : > { %s2835_s22 = smul.u32 24576, %s4942_s27  ;;  %p5628_p2 = scmp.ne.s32.totalorder %s5627_s18, 0 }
  0x3f   : > { %s269_s15 = scalar_lea.vmem [#allocation4], %s4700_s21  ;;  %s4849_s13 = scalar_lea.hbm %s5614_s3, 98304 }
  0x40   : > { %s5124_s30 = scalar_lea.hbm %s5614_s3, %s2835_s22  ;;  %s276_s8 = sshll.u32 %s269_s15, 4  ;;  %s5126_s8 = int_to_ptr.vmem [resolvable:$true] %s276_s8 }
  0x41   : > { %s4844_s17 = scalar_lea.hbm %s5124_s30, 24576  ;;  %p4846_p1 = pneg %p5628_p2 }
  0x42   : > { %p4845_p13 = scmp.ne.s32.totalorder %s5124_s30, %s4844_s17  ;;  %p4850_p9 = scmp.lt.u32.totalorder %s5124_s30, %s5614_s3 }
  0x43   : > { %p4851_p10 = scmp.lt.u32.totalorder %s4849_s13, %s4844_s17  ;;  %p4853_p3 = scmp.lt.u32.totalorder %s4844_s17, %s5124_s30 }
  0x44   : > { %p4847_p5 = pnand %p4846_p1, %p4845_p13 }
  0x45   : > { %p4852_p0 = por %p4851_p10, %p4850_p9 }
  0x46   : > { %p4848_p8 = pneg %p4847_p5 }
  0x47   : > { %p4854_p4 = por %p4853_p3, %p4852_p0 }
  0x49   : > { %p4855_p6 = pnand %p4854_p4, %p4848_p8 }
  0x4b   : > { %4858 = shalt.err (!%p4855_p6)
}
  0x4c   : > { %s4859_s19 = scalar_lea.vmem %s5126_s8, 24576  ;;  %s4946_s21 = smov [#allocation4]  }
  0x4d   : > { %p4860_p7 = scmp.ne.s32.totalorder %s5126_s8, %s4859_s19  ;;  %s4864_s22 = sshll.u32 %s4946_s21, 4  ;;  %s4865_s22 = int_to_ptr.vmem [resolvable:$false] %s4864_s22 }
  0x4e   : > { %s4866_s23 = scalar_lea.vmem %s4865_s22, 49152  ;;  %p4867_p13 = scmp.lt.s32.totalorder %s5126_s8, %s4865_s22 }
  0x4f   : > { %p4862_p11 = pnand %p4860_p7, %p4846_p1  ;;  %p4868_p5 = scmp.lt.s32.totalorder %s4866_s23, %s4859_s19 }
  0x51   : > { %p4863_p12 = pneg %p4862_p11  ;;  %p4869_p9 = por %p4868_p5, %p4867_p13 }
  0x53   : > { %p4870_p10 = pnand %p4869_p9, %p4863_p12 }
  0x55   : > { %4873 = shalt.err (!%p4870_p10)
}
  0x56   : > { %s4947_s24 = smov 64   ;;  %s4948_s15 = smov 4  }
  0x57   : > { %4726 = dma.hbm_to_vmem [thread:$0]  (!%p5628_p2), %s5124_s30, 24576, %s5126_s8, %s5130_s10, %s4947_s24, %s4947_s24, %s4948_s15  }
  0x58   : > { %p5629_p1 = scmp.ne.s32.totalorder %s5625_s12, 0 }
  0x59   : > { %s290_s17 = sand.u32 (!%p5629_p1), 1, %s4934_s25   ;;  %p5630_p8 = scmp.ne.s32.totalorder (!%p5629_p1), %s5624_s11, 0 }
  0x5a   : > { %288 = sbr.rel (%p5629_p1) target bundleno = 994 (0x3e2), region = 48  ;;  %s291_s14 = scalar_lea.sflag (!%p5629_p1), [#allocation5], %s290_s17 }
  0x5b   : > { %s4701_s27 = smul.u32 (!%p5629_p1), 1536, %s290_s17 }
  0x5d   : > { %s5161_s13 = scalar_lea.vmem (!%p5629_p1), [#allocation4], %s4701_s27 }
  0x61   : > { %4917 = dma.done.wait (%p5630_p8), %s291_s14, 24576  }
  0x62   : > { %4919 = vsyncadd (%p5630_p8), %s291_s14, 4294942720  ;;  %p5631_p0 = scmp.eq.s32.totalorder %s5019_s28, 0 }
  0x64   : > { %4921 = dma.done.wait (%p5631_p0), [#allocation8], 32   ;;  %p5632_p2 = pmov %p5631_p0 }
  0x65   : > { %p336_p3 = scmp.lt.s32.totalorder %s5019_s28, 3  ;;  %p5633_p4 = scmp.ne.s32.totalorder %s5019_s28, 0 }
  0x66   : > { %4923 = vsyncadd (%p5632_p2), [#allocation8], 4294967264  ;;  %v4949_v0 = vmov (!%p5633_p4), 0.0  }
  0x67   : > { %s337_s12 = scalar_select %p336_p3, %s5019_s28, 3 }
  0x68   : > { %348 = sbr.rel (%p5633_p4) target bundleno = 111 (0x6f), region = 64  ;;  %349 = vst [vmem:[#allocation3] sm:$0x3] (!%p5633_p4), %v4949_v0 }
  0x69   : > { %s2821_s18 = sshll.u32 %s337_s12, 3 }
  0x6a   : > { %s339_s10 = scalar_lea.vmem %s5612_s1, %s2821_s18  ;;  %s5179_s11 = scalar_lea.vmem %s5613_s2, %s2821_s18 }
  0x6f PF: > { %v352_v1 = vld [vmem:[%s5611_s0 + $0x8] sm:$0xff]  ;;  %v359_v2 = vld [vmem:[%s5611_s0 + $0x40] sm:$0xff]  ;;  %v358_v5 = vld [vmem:[%s5611_s0 + $0x38] sm:$0xff]  ;;  %v4950_v8 = vmov 0.0   ;;  %v4951_v14 = vmov 0   ;;  %vm371_vm0 = vcmask 130048   ;;  %v670_v63 = vlaneseq }
  0x70   : > { %v351_v3 = vld [vmem:[%s5611_s0] sm:$0xff]  ;;  %v4277_v4 = vpack.c.bf16 %v359_v2, %v352_v1  ;;  %v354_v6 = vld [vmem:[%s5611_s0 + $0x18] sm:$0xff]  ;;  %v361_v7 = vld [vmem:[%s5611_s0 + $0x50] sm:$0xff]  ;;  %439 = vmatprep.mubr.f32.mxu0 %v4950_v8  ;;  %510 = vmatprep.mubr.f32.mxu1 %v4950_v8  ;;  %v4952_v26 = vmov 0.0|0.0   ;;  %vm4953_vm1 = vmmov 0   ;;  %p2828_p6 = scmp.ne.s32.totalorder %s5019_s28, 3 }
  0x71   : > { %v4279_v9 = vpack.c.bf16 %v358_v5, %v351_v3  ;;  %v4281_v10 = vpack.c.bf16 %v361_v7, %v354_v6  ;;  %v353_v11 = vld [vmem:[%s5611_s0 + $0x10] sm:$0xff]  ;;  %v360_v12 = vld [vmem:[%s5611_s0 + $0x48] sm:$0xff]  ;;  %v350_v13 = vld [vmem:[%s339_s10] sm:$0xff]  ;;  %4781 = vset.pattern.permute.xlu0 %v4951_v14  ;;  %v4954_v61 = vmov 1966171168   ;;  %v5264_v2 = vshrl.u32 %v670_v63, 7 }
  0x72   : > { %4278 = vmatprep.subr.bf16.mxu0 %v4277_v4  ;;  %v4283_v15 = vpack.c.bf16 %v360_v12, %v353_v11  ;;  %v356_v16 = vld [vmem:[%s5611_s0 + $0x28] sm:$0xff]  ;;  %v363_v17 = vld [vmem:[%s5611_s0 + $0x60] sm:$0xff]  ;;  %v362_v20 = vld [vmem:[%s5611_s0 + $0x58] sm:$0xff]  ;;  %v668_v62 = vunpack.c.l.s4 %v4954_v61  ;;  %vm5267_vm2 = vcmp.lt.s32.totalorder %v670_v63, 384  ;;  %vm4957_vm3 = vmmov (!%p2828_p6), 0  }
  0x73   : > { %v355_v18 = vld [vmem:[%s5611_s0 + $0x20] sm:$0xff]  ;;  %4280 = vmatpush1.bf16.msra.mxu0 %v4279_v9  ;;  %4282 = vmatprep.subr.bf16.mxu1 %v4281_v10  ;;  %v4285_v19 = vpack.c.bf16 %v363_v17, %v356_v16  ;;  %v357_v21 = vld [vmem:[%s5611_s0 + $0x30] sm:$0xff]  ;;  %v364_v22 = vld [vmem:[%s5611_s0 + $0x68] sm:$0xff]  ;;  %vm2710_vm4 = vcmask (!%p2828_p6), 25600  }
  0x74   : > { %4284 = vmatpush1.bf16.msra.mxu1 %v4283_v15  ;;  %v4287_v23 = vpack.c.bf16 %v362_v20, %v355_v18  ;;  %v4290_v24 = vpack.c.bf16 %v364_v22, %v357_v21  ;;  %v365_v25 = vld [vmem:[%s5179_s11] sm:$0xff]  ;;  %v3611_v27 = vld [vmem:[%s5161_s13 + $0x40] sm:$0xff]   ;;  %v3614_v39 = vld [vmem:[%s5161_s13 + $0x58] sm:$0xff]   ;;  %v669_v1 = vunpack.c.0.s8 %v668_v62 }
  0x75   : > { %4286 = vmatprep.subr.bf16.mxu0 %v4285_v19  ;;  %4289 = vmatprep.subr.bf16.mxu1 %v4952_v26  ;;  %v2837_v28 = vld [vmem:[%s5161_s13] sm:$0xff]   ;;  %v3612_v31 = vld [vmem:[%s5161_s13 + $0x48] sm:$0xff]   ;;  %v3613_v35 = vld [vmem:[%s5161_s13 + $0x50] sm:$0xff]  }
  0x76   : > { %2824 = vmatmul.mubr.msk.f32.vlgmr.msra.gmra.mrb[0].mxu0 %vm371_vm0, %v350_v13  ;;  %368 = vperm.xlu0 %4781, %v365_v25   ;;  %v3627_v29 = vld [vmem:[%s5161_s13 + $0xc0] sm:$0xff]   ;;  %v3604_v32 = vld [vmem:[%s5161_s13 + $0x8] sm:$0xff]   ;;  %v3605_v36 = vld [vmem:[%s5161_s13 + $0x10] sm:$0xff]  }
  0x77   : > { %2825 = vmatmul.mubr.msk.f32.vlgmr.msra.gmra.mrb[0].mxu1 %vm371_vm0, %v350_v13  ;;  %4288 = vmatpush1.bf16.msra.mxu0 %v4287_v23  ;;  %v3619_v30 = vld [vmem:[%s5161_s13 + $0x80] sm:$0xff]   ;;  %v3628_v33 = vld [vmem:[%s5161_s13 + $0xc8] sm:$0xff]   ;;  %v3629_v37 = vld [vmem:[%s5161_s13 + $0xd0] sm:$0xff]  }
  0x78   : > { %4291 = vmatpush3.bf16.msra.mxu1 %v4290_v24  ;;  %580 = vmatprep.mubr.f32.mxu0 %v4950_v8  ;;  %v3620_v34 = vld [vmem:[%s5161_s13 + $0x88] sm:$0xff]   ;;  %v3621_v38 = vld [vmem:[%s5161_s13 + $0x90] sm:$0xff]   ;;  %v3606_v40 = vld [vmem:[%s5161_s13 + $0x18] sm:$0xff]  }
  0x79   : > { %4239 = vmatprep.mubr.msk.f32.mxu1 %vm4953_vm1, %v4950_v8  ;;  %4293 = vmatprep.subr.bf16.mxu0 %v3611_v27  ;;  %v3630_v41 = vld [vmem:[%s5161_s13 + $0xd8] sm:$0xff]   ;;  %v3615_v43 = vld [vmem:[%s5161_s13 + $0x60] sm:$0xff]   ;;  %v3616_v47 = vld [vmem:[%s5161_s13 + $0x68] sm:$0xff]   ;;  %v672_v8 = vsub.s32 %v669_v1, %v5264_v2 }
  0x7a   : > { %2826 = vmatmul.mubr.msk.f32.vlgmr.msra.gmra.mrb[2].mxu0 %vm371_vm0, %v350_v13  ;;  %4325 = vmatprep.subr.bf16.mxu1 %v3627_v29  ;;  %v3622_v42 = vld [vmem:[%s5161_s13 + $0x98] sm:$0xff]   ;;  %v3607_v44 = vld [vmem:[%s5161_s13 + $0x20] sm:$0xff]   ;;  %v3608_v48 = vld [vmem:[%s5161_s13 + $0x28] sm:$0xff]  }
  0x7b   : > { %4240 = vmatmul.mubr.msk.f32.vlgmr.msra.gmra.mrb[2].mxu1 %vm371_vm0, %v350_v13  ;;  %4295 = vmatpush3.bf16.msra.mxu0 %v2837_v28  ;;  %v3631_v45 = vld [vmem:[%s5161_s13 + $0xe0] sm:$0xff]   ;;  %v3632_v49 = vld [vmem:[%s5161_s13 + $0xe8] sm:$0xff]   ;;  %v3617_v51 = vld [vmem:[%s5161_s13 + $0x70] sm:$0xff]  }
  0x7c   : > { %4327 = vmatpush3.bf16.msra.mxu1 %v3619_v30  ;;  %4297 = vmatprep.subr.bf16.mxu0 %v3612_v31  ;;  %v3623_v46 = vld [vmem:[%s5161_s13 + $0xa0] sm:$0xff]   ;;  %v3624_v50 = vld [vmem:[%s5161_s13 + $0xa8] sm:$0xff]   ;;  %v3609_v52 = vld [vmem:[%s5161_s13 + $0x30] sm:$0xff]  }
  0x7d   : > { %4329 = vmatprep.subr.bf16.mxu1 %v3628_v33  ;;  %v3633_v53 = vld [vmem:[%s5161_s13 + $0xf0] sm:$0xff]   ;;  %v3618_v54 = vld [vmem:[%s5161_s13 + $0x78] sm:$0xff]   ;;  %v3643_v59 = vld [vmem:[%s5161_s13 + $0x140] sm:$0xff]  }
  0x7e   : > { %v3625_v55 = vld [vmem:[%s5161_s13 + $0xb0] sm:$0xff]   ;;  %v3634_v56 = vld [vmem:[%s5161_s13 + $0xf8] sm:$0xff]   ;;  %v3659_v60 = vld [vmem:[%s5161_s13 + $0x1c0] sm:$0xff]  }
  0x7f   : > { %4299 = vmatpush3.bf16.msra.mxu0 %v3604_v32  ;;  %v3610_v57 = vld [vmem:[%s5161_s13 + $0x38] sm:$0xff]  }
  0x80   : > { %4331 = vmatpush3.bf16.msra.mxu1 %v3620_v34  ;;  %4301 = vmatprep.subr.bf16.mxu0 %v3613_v35  ;;  %v3626_v58 = vld [vmem:[%s5161_s13 + $0xb8] sm:$0xff]  }
  0x81   : > { %4333 = vmatprep.subr.bf16.mxu1 %v3629_v37  ;;  %v3654_v29 = vld [vmem:[%s5161_s13 + $0x198] sm:$0xff]  }
  0x83   : > { %4303 = vmatpush3.bf16.msra.mxu0 %v3605_v36 }
  0x84   : > { %4335 = vmatpush3.bf16.msra.mxu1 %v3621_v38  ;;  %4305 = vmatprep.subr.bf16.mxu0 %v3614_v39  ;;  %v4955_v39 = vmov 1983009808  }
  0x85   : > { %4337 = vmatprep.subr.bf16.mxu1 %v3630_v41 }
  0x87   : > { %4307 = vmatpush3.bf16.msra.mxu0 %v3606_v40  ;;  %v1637_v40 = vunpack.c.l.s4 %v4955_v39  ;;  %v3641_v39 = vld [vmem:[%s5161_s13 + $0x130] sm:$0xff]  }
  0x88   : > { %4339 = vmatpush3.bf16.msra.mxu1 %v3622_v42  ;;  %4309 = vmatprep.subr.bf16.mxu0 %v3615_v43 }
  0x89   : > { %4341 = vmatprep.subr.bf16.mxu1 %v3631_v45  ;;  %v1638_v61 = vunpack.c.0.s8 %v1637_v40 }
  0x8b   : > { %4311 = vmatpush3.bf16.msra.mxu0 %v3607_v44 }
  0x8c   : > { %4343 = vmatpush3.bf16.msra.mxu1 %v3623_v46  ;;  %4313 = vmatprep.subr.bf16.mxu0 %v3616_v47 }
  0x8d   : > { %4345 = vmatprep.subr.bf16.mxu1 %v3632_v49 }
  0x8f   : > { %4315 = vmatpush3.bf16.msra.mxu0 %v3608_v48 }
  0x90   : > { %4347 = vmatpush3.bf16.msra.mxu1 %v3624_v50  ;;  %4317 = vmatprep.subr.bf16.mxu0 %v3617_v51 }
  0x91   : > { %4349 = vmatprep.subr.bf16.mxu1 %v3633_v53 }
  0x93   : > { %4319 = vmatpush3.bf16.msra.mxu0 %v3609_v52 }
  0x94   : > { %4321 = vmatprep.subr.bf16.mxu0 %v3618_v54  ;;  %4351 = vmatpush3.bf16.msra.mxu1 %v3625_v55 }
  0x95   : > { %4353 = vmatprep.subr.bf16.mxu1 %v3634_v56 }
  0x97   : > { %4323 = vmatpush3.bf16.msra.mxu0 %v3610_v57 }
  0x98   : > { %4355 = vmatpush3.bf16.msra.mxu1 %v3626_v58  ;;  %4357 = vmatprep.subr.bf16.mxu0 %v3643_v59 }
  0x99   : > { %4389 = vmatprep.subr.bf16.mxu1 %v3659_v60 }
  0xf5   : > { %v369_v0 = vpop.permute.xlu0 %368 }
 0x149   : > { %v441_v3 = vpop.f32.mrb[0].mxu0 }
 0x14a   : > { %v442_v4 = vadd.f32 %v441_v3, %v369_v0  ;;  %v443_v5 = vpop.f32.mrb[1].mxu0  ;;  %v512_v6 = vpop.f32.mrb[0].mxu1  ;;  %v5304_v3 = vsub.s32 %v1638_v61, %v5264_v2  ;;  %v3669_v61 = vld [vmem:[%s5161_s13 + $0x210] sm:$0xff]  }
 0x14b   : > { %v444_v7 = vadd.f32 %v443_v5, %v369_v0  ;;  %v513_v9 = vadd.f32 %v512_v6, %v369_v0  ;;  %v514_v10 = vpop.f32.mrb[1].mxu1 }
 0x14c   : > { %v657_v11 = vmax.f32 %v442_v4, 0.0 }
 0x14d   : > { %v658_v12 = vmax.f32 %v444_v7, 0.0  ;;  %v659_v13 = vmax.f32 %v513_v9, 0.0  ;;  %v582_v14 = vpop.f32.mrb[2].mxu0 }
 0x14e   : > { %v583_v15 = vadd.f32 %v582_v14, %v369_v0  ;;  %v584_v16 = vpop.f32.mrb[3].mxu0  ;;  %v653_v17 = vpop.f32.mrb[2].mxu1 }
 0x14f   : > { %v666_v18 = vcombine.low %v657_v11, %v658_v12  ;;  %v714_v19 = vcombine.high %v657_v11, %v658_v12  ;;  %v680_v20 = vrot.slane %v659_v13, %v672_v8  ;;  %v715_v21 = vcombine.high %v659_v13, %v659_v13  ;;  %v4241_v22 = vpop.f32.mrb[3].mxu1  ;;  %v3635_v12 = vld [vmem:[%s5161_s13 + $0x100] sm:$0xff]  }
 0x150   : > { %v660_v23 = vmax.f32 %v583_v15, 0.0  ;;  %v585_v24 = vadd.f32 %v584_v16, %v369_v0  ;;  %v654_v25 = vadd.f32 %v653_v17, %v369_v0  ;;  %v3651_v15 = vld [vmem:[%s5161_s13 + $0x180] sm:$0xff]   ;;  %v3644_v16 = vld [vmem:[%s5161_s13 + $0x148] sm:$0xff]   ;;  %v3661_v22 = vld [vmem:[%s5161_s13 + $0x1d0] sm:$0xff]  }
 0x151   : > { %v673_v26 = vrot.slane %v666_v18, %v672_v8  ;;  %v722_v27 = vrot.slane %v714_v19, %v672_v8  ;;  %v729_v28 = vrot.slane %v715_v21, %v672_v8  ;;  %v3660_v18 = vld [vmem:[%s5161_s13 + $0x1c8] sm:$0xff]  }
 0x152   : > { %v661_v30 = vmax.f32 %v585_v24, 0.0  ;;  %v662_v31 = vmax.f32 %v654_v25, 0.0  ;;  %v3636_v19 = vld [vmem:[%s5161_s13 + $0x108] sm:$0xff]   ;;  %v3646_v24 = vld [vmem:[%s5161_s13 + $0x158] sm:$0xff]   ;;  %v3653_v25 = vld [vmem:[%s5161_s13 + $0x190] sm:$0xff]  }
 0x153   : > { %v681_v32 = vcombine.low %v673_v26, %v680_v20  ;;  %v695_v33 = vcombine.high %v673_v26, %v680_v20  ;;  %v730_v34 = vcombine.low %v722_v27, %v729_v28  ;;  %v741_v35 = vcombine.high %v722_v27, %v729_v28  ;;  %v3645_v20 = vld [vmem:[%s5161_s13 + $0x150] sm:$0xff]   ;;  %v3652_v21 = vld [vmem:[%s5161_s13 + $0x188] sm:$0xff]   ;;  %v3662_v26 = vld [vmem:[%s5161_s13 + $0x1d8] sm:$0xff]  }
 0x154   : > { %v763_v36 = vcombine.low %v660_v23, %v661_v30  ;;  %v808_v37 = vcombine.high %v660_v23, %v661_v30  ;;  %v809_v38 = vcombine.high %v662_v31, %v662_v31  ;;  %v777_v47 = vrot.slane %v662_v31, %v672_v8  ;;  %v3637_v23 = vld [vmem:[%s5161_s13 + $0x110] sm:$0xff]   ;;  %v3638_v27 = vld [vmem:[%s5161_s13 + $0x118] sm:$0xff]   ;;  %v3647_v28 = vld [vmem:[%s5161_s13 + $0x160] sm:$0xff]  }
 0x155   : > { %v688_v41 = vrot.slane %v681_v32, %v672_v8  ;;  %v702_v42 = vrot.slane %v695_v33, %v672_v8  ;;  %v737_v43 = vrot.slane %v730_v34, %v672_v8  ;;  %v748_v44 = vrot.slane %v741_v35, %v672_v8  ;;  %v3663_v30 = vld [vmem:[%s5161_s13 + $0x1e0] sm:$0xff]   ;;  %v3648_v32 = vld [vmem:[%s5161_s13 + $0x168] sm:$0xff]  }
 0x156   : > { %v770_v45 = vrot.slane %v763_v36, %v672_v8  ;;  %v816_v46 = vrot.slane %v808_v37, %v672_v8  ;;  %v823_v48 = vrot.slane %v809_v38, %v672_v8  ;;  %v3639_v31 = vld [vmem:[%s5161_s13 + $0x120] sm:$0xff]   ;;  %v3664_v34 = vld [vmem:[%s5161_s13 + $0x1e8] sm:$0xff]   ;;  %v3649_v36 = vld [vmem:[%s5161_s13 + $0x170] sm:$0xff]  }
 0x157   : > { %694 = vst.msk [vmem:[#allocation2] ss:$2 sm:$0x7] %vm5267_vm2, %v688_v41  ;;  %705 = vst.msk [vmem:[#allocation2 + $0x6] ss:$2 sm:$0x7] %vm5267_vm2, %v702_v42  ;;  %v706_v49 = vcombine.high %v688_v41, %v688_v41  ;;  %v710_v50 = vcombine.high %v702_v42, %v702_v42  ;;  %v752_v51 = vcombine.high %v737_v43, %v737_v43 }
 0x158   : > { %740 = vst.msk [vmem:[#allocation2 + $0x18] ss:$2 sm:$0x7] %vm5267_vm2, %v737_v43  ;;  %751 = vst.msk [vmem:[#allocation2 + $0x1e] ss:$2 sm:$0x7] %vm5267_vm2, %v748_v44  ;;  %v756_v52 = vcombine.high %v748_v44, %v748_v44  ;;  %v778_v53 = vcombine.low %v770_v45, %v777_v47  ;;  %v789_v54 = vcombine.high %v770_v45, %v777_v47 }
 0x159   : > { %v824_v55 = vcombine.low %v816_v46, %v823_v48  ;;  %v835_v56 = vcombine.high %v816_v46, %v823_v48  ;;  %709 = vst.msk [vmem:[#allocation2 + $0xc] ss:$2 sm:$0x7] %vm5267_vm2, %v706_v49  ;;  %713 = vst.msk [vmem:[#allocation2 + $0x12] ss:$2 sm:$0x7] %vm5267_vm2, %v710_v50 }
 0x15a   : > { %755 = vst.msk [vmem:[#allocation2 + $0x24] ss:$2 sm:$0x7] %vm5267_vm2, %v752_v51  ;;  %759 = vst.msk [vmem:[#allocation2 + $0x2a] ss:$2 sm:$0x7] %vm5267_vm2, %v756_v52  ;;  %v785_v57 = vrot.slane %v778_v53, %v672_v8  ;;  %v796_v58 = vrot.slane %v789_v54, %v672_v8 }
 0x15b   : > { %v831_v59 = vrot.slane %v824_v55, %v672_v8  ;;  %v842_v60 = vrot.slane %v835_v56, %v672_v8  ;;  %v3655_v33 = vld [vmem:[%s5161_s13 + $0x1a0] sm:$0xff]   ;;  %v3640_v35 = vld [vmem:[%s5161_s13 + $0x128] sm:$0xff]   ;;  %v3665_v38 = vld [vmem:[%s5161_s13 + $0x1f0] sm:$0xff]  }
 0x15c   : > { %788 = vst.msk [vmem:[#allocation2 + $0x1] ss:$2 sm:$0x7] %vm5267_vm2, %v785_v57  ;;  %799 = vst.msk [vmem:[#allocation2 + $0x7] ss:$2 sm:$0x7] %vm5267_vm2, %v796_v58  ;;  %v800_v62 = vcombine.high %v785_v57, %v785_v57  ;;  %v804_v63 = vcombine.high %v796_v58, %v796_v58 }
 0x15d   : > { %834 = vst.msk [vmem:[#allocation2 + $0x19] ss:$2 sm:$0x7] %vm5267_vm2, %v831_v59  ;;  %845 = vst.msk [vmem:[#allocation2 + $0x1f] ss:$2 sm:$0x7] %vm5267_vm2, %v842_v60  ;;  %v846_v0 = vcombine.high %v831_v59, %v831_v59  ;;  %v850_v1 = vcombine.high %v842_v60, %v842_v60 }
 0x15e   : > { %803 = vst.msk [vmem:[#allocation2 + $0xd] ss:$2 sm:$0x7] %vm5267_vm2, %v800_v62  ;;  %807 = vst.msk [vmem:[#allocation2 + $0x13] ss:$2 sm:$0x7] %vm5267_vm2, %v804_v63 }
 0x15f   : > { %849 = vst.msk [vmem:[#allocation2 + $0x25] ss:$2 sm:$0x7] %vm5267_vm2, %v846_v0  ;;  %853 = vst.msk [vmem:[#allocation2 + $0x2b] ss:$2 sm:$0x7] %vm5267_vm2, %v850_v1 }
 0x160   : > { %v3656_v37 = vld [vmem:[%s5161_s13 + $0x1a8] sm:$0xff]   ;;  %v3650_v41 = vld [vmem:[%s5161_s13 + $0x178] sm:$0xff]   ;;  %v3657_v42 = vld [vmem:[%s5161_s13 + $0x1b0] sm:$0xff]  }
 0x161   : > { %v3666_v43 = vld [vmem:[%s5161_s13 + $0x1f8] sm:$0xff]   ;;  %v3675_v46 = vld [vmem:[%s5161_s13 + $0x240] sm:$0xff]   ;;  %v3676_v53 = vld [vmem:[%s5161_s13 + $0x248] sm:$0xff]  }
 0x162   : > { %v3642_v45 = vld [vmem:[%s5161_s13 + $0x138] sm:$0xff]   ;;  %v3691_v49 = vld [vmem:[%s5161_s13 + $0x2c0] sm:$0xff]   ;;  %v3692_v56 = vld [vmem:[%s5161_s13 + $0x2c8] sm:$0xff]  }
 0x163   : > { %v855_v4 = vld [vmem:[#allocation2] sm:$0xff]  ;;  %v3658_v48 = vld [vmem:[%s5161_s13 + $0x1b8] sm:$0xff]   ;;  %v3667_v51 = vld [vmem:[%s5161_s13 + $0x200] sm:$0xff]  }
 0x164   : > { %v1642_v5 = vrot.slane %v855_v4, %v5304_v3  ;;  %v1635_v6 = vcombine.high %v855_v4, %v855_v4  ;;  %v3683_v54 = vld [vmem:[%s5161_s13 + $0x280] sm:$0xff]   ;;  %v3668_v57 = vld [vmem:[%s5161_s13 + $0x208] sm:$0xff]   ;;  %v3677_v58 = vld [vmem:[%s5161_s13 + $0x250] sm:$0xff]  }
 0x165   : > { %v856_v7 = vld [vmem:[#allocation2 + $0x8] sm:$0xff]  ;;  %v857_v40 = vld [vmem:[#allocation2 + $0x10] sm:$0xff]  ;;  %v3684_v59 = vld [vmem:[%s5161_s13 + $0x288] sm:$0xff]  }
 0x166   : > { %v1650_v8 = vcombine.high %v1642_v5, %v1642_v5  ;;  %v1649_v9 = vrot.slane %v1635_v6, %v5304_v3  ;;  %v5309_v10 = vrot.slane %v856_v7, %v5304_v3  ;;  %v1652_v11 = vcombine.high %v856_v7, %v856_v7  ;;  %v3693_v60 = vld [vmem:[%s5161_s13 + $0x2d0] sm:$0xff]   ;;  %v3678_v62 = vld [vmem:[%s5161_s13 + $0x258] sm:$0xff]   ;;  %v3679_v4 = vld [vmem:[%s5161_s13 + $0x260] sm:$0xff]  }
 0x167   : > { %v1669_v44 = vcombine.high %v857_v40, %v857_v40  ;;  %v5349_v47 = vrot.slane %v857_v40, %v5304_v3  ;;  %v3685_v63 = vld [vmem:[%s5161_s13 + $0x290] sm:$0xff]   ;;  %v3694_v0 = vld [vmem:[%s5161_s13 + $0x2d8] sm:$0xff]   ;;  %v3695_v6 = vld [vmem:[%s5161_s13 + $0x2e0] sm:$0xff]  }
 0x168   : > { %1825 = vmatprep.mubr.f32.mxu0 %v1650_v8  ;;  %v1651_v2 = vcombine.high %v1649_v9, %v1649_v9  ;;  %v1667_v13 = vcombine.high %v5309_v10, %v5309_v10  ;;  %v5315_v14 = vrot.slane %v1652_v11, %v5304_v3  ;;  %v3670_v1 = vld [vmem:[%s5161_s13 + $0x218] sm:$0xff]   ;;  %v3671_v7 = vld [vmem:[%s5161_s13 + $0x220] sm:$0xff]   ;;  %v3680_v8 = vld [vmem:[%s5161_s13 + $0x268] sm:$0xff]  }
 0x169   : > { %1826 = vmatmul.mubr.f32.vlgmr.msra.gmra.mrb[4].mxu0 %v1642_v5  ;;  %v5354_v50 = vrot.slane %v1669_v44, %v5304_v3  ;;  %v1684_v52 = vcombine.high %v5349_v47, %v5349_v47  ;;  %v3686_v5 = vld [vmem:[%s5161_s13 + $0x298] sm:$0xff]   ;;  %v3672_v11 = vld [vmem:[%s5161_s13 + $0x228] sm:$0xff]   ;;  %v3703_v44 = vld [vmem:[%s5161_s13 + $0x320] sm:$0xff]  }
 0x16a   : > { %4359 = vmatpush3.bf16.msra.mxu0 %v3635_v12  ;;  %1895 = vmatprep.mubr.f32.mxu1 %v1651_v2  ;;  %v1668_v17 = vcombine.high %v5315_v14, %v5315_v14  ;;  %v3681_v12 = vld [vmem:[%s5161_s13 + $0x270] sm:$0xff]   ;;  %v3688_v2 = vld [vmem:[%s5161_s13 + $0x2a8] sm:$0xff]   ;;  %v3702_v40 = vld [vmem:[%s5161_s13 + $0x318] sm:$0xff]  }
 0x16b   : > { %1965 = vmatprep.mubr.f32.mxu0 %v1667_v13  ;;  %1896 = vmatmul.mubr.f32.vlgmr.msra.gmra.mrb[4].mxu1 %v1649_v9  ;;  %v1685_v55 = vcombine.high %v5354_v50, %v5354_v50  ;;  %v3687_v9 = vld [vmem:[%s5161_s13 + $0x2a0] sm:$0xff]   ;;  %v3697_v13 = vld [vmem:[%s5161_s13 + $0x2f0] sm:$0xff]  }
 0x16c   : > { %4391 = vmatpush3.bf16.msra.mxu1 %v3651_v15  ;;  %4361 = vmatprep.subr.bf16.mxu0 %v3644_v16  ;;  %v858_v15 = vld [vmem:[#allocation2 + $0x18] sm:$0xff]  ;;  %v3682_v16 = vld [vmem:[%s5161_s13 + $0x278] sm:$0xff]  }
 0x16d   : > { %2035 = vmatprep.mubr.f32.mxu1 %v1668_v17  ;;  %4393 = vmatprep.subr.bf16.mxu1 %v3660_v18  ;;  %v3689_v17 = vld [vmem:[%s5161_s13 + $0x2b0] sm:$0xff]   ;;  %v3698_v18 = vld [vmem:[%s5161_s13 + $0x2f8] sm:$0xff]  }
 0x16e   : > { %4363 = vmatpush3.bf16.msra.mxu0 %v3636_v19  ;;  %v1686_v19 = vcombine.high %v858_v15, %v858_v15 }
 0x16f   : > { %4365 = vmatprep.subr.bf16.mxu0 %v3645_v20  ;;  %v3674_v20 = vld [vmem:[%s5161_s13 + $0x238] sm:$0xff]  }
 0x170   : > { %4395 = vmatpush3.bf16.msra.mxu1 %v3652_v21  ;;  %v3707_v21 = vld [vmem:[%s5161_s13 + $0x340] sm:$0xff]  }
 0x171   : > { %4397 = vmatprep.subr.bf16.mxu1 %v3661_v22  ;;  %v5393_v22 = vrot.slane %v858_v15, %v5304_v3  ;;  %v3734_v15 = vld [vmem:[%s5161_s13 + $0x418] sm:$0xff]  }
 0x172   : > { %4367 = vmatpush3.bf16.msra.mxu0 %v3637_v23  ;;  %v3690_v23 = vld [vmem:[%s5161_s13 + $0x2b8] sm:$0xff]  }
 0x173   : > { %4369 = vmatprep.subr.bf16.mxu0 %v3646_v24  ;;  %v3723_v24 = vld [vmem:[%s5161_s13 + $0x3c0] sm:$0xff]  }
 0x174   : > { %4399 = vmatpush3.bf16.msra.mxu1 %v3653_v25  ;;  %v5398_v25 = vrot.slane %v1686_v19, %v5304_v3  ;;  %v3735_v19 = vld [vmem:[%s5161_s13 + $0x420] sm:$0xff]  }
 0x175   : > { %4401 = vmatprep.subr.bf16.mxu1 %v3662_v26  ;;  %v3699_v26 = vld [vmem:[%s5161_s13 + $0x300] sm:$0xff]  }
 0x176   : > { %4371 = vmatpush3.bf16.msra.mxu0 %v3638_v27  ;;  %v1701_v27 = vcombine.high %v5393_v22, %v5393_v22 }
 0x177   : > { %4373 = vmatprep.subr.bf16.mxu0 %v3647_v28  ;;  %v3708_v28 = vld [vmem:[%s5161_s13 + $0x348] sm:$0xff]  }
 0x178   : > { %4403 = vmatpush3.bf16.msra.mxu1 %v3654_v29  ;;  %v3715_v29 = vld [vmem:[%s5161_s13 + $0x380] sm:$0xff]  }
 0x179   : > { %4405 = vmatprep.subr.bf16.mxu1 %v3663_v30  ;;  %v1702_v30 = vcombine.high %v5398_v25, %v5398_v25 }
 0x17a   : > { %4375 = vmatpush3.bf16.msra.mxu0 %v3639_v31  ;;  %v3724_v31 = vld [vmem:[%s5161_s13 + $0x3c8] sm:$0xff]  }
 0x17b   : > { %4377 = vmatprep.subr.bf16.mxu0 %v3648_v32  ;;  %v3700_v32 = vld [vmem:[%s5161_s13 + $0x308] sm:$0xff]  }
 0x17c   : > { %4407 = vmatpush3.bf16.msra.mxu1 %v3655_v33  ;;  %v3709_v33 = vld [vmem:[%s5161_s13 + $0x350] sm:$0xff]  }
 0x17d   : > { %4409 = vmatprep.subr.bf16.mxu1 %v3664_v34  ;;  %v3716_v34 = vld [vmem:[%s5161_s13 + $0x388] sm:$0xff]  }
 0x17e   : > { %4379 = vmatpush3.bf16.msra.mxu0 %v3640_v35  ;;  %v3725_v35 = vld [vmem:[%s5161_s13 + $0x3d0] sm:$0xff]  }
 0x17f   : > { %4381 = vmatprep.subr.bf16.mxu0 %v3649_v36  ;;  %v3701_v36 = vld [vmem:[%s5161_s13 + $0x310] sm:$0xff]  }
 0x180   : > { %4411 = vmatpush3.bf16.msra.mxu1 %v3656_v37  ;;  %v3710_v37 = vld [vmem:[%s5161_s13 + $0x358] sm:$0xff]  }
 0x181   : > { %4413 = vmatprep.subr.bf16.mxu1 %v3665_v38  ;;  %v3717_v38 = vld [vmem:[%s5161_s13 + $0x390] sm:$0xff]  }
 0x182   : > { %4383 = vmatpush3.bf16.msra.mxu0 %v3641_v39  ;;  %v3726_v39 = vld [vmem:[%s5161_s13 + $0x3d8] sm:$0xff]  }
 0x183   : > { %4385 = vmatprep.subr.bf16.mxu0 %v3650_v41  ;;  %v3711_v41 = vld [vmem:[%s5161_s13 + $0x360] sm:$0xff]  }
 0x184   : > { %4415 = vmatpush3.bf16.msra.mxu1 %v3657_v42  ;;  %v3718_v42 = vld [vmem:[%s5161_s13 + $0x398] sm:$0xff]  }
 0x185   : > { %4417 = vmatprep.subr.bf16.mxu1 %v3666_v43  ;;  %v3727_v43 = vld [vmem:[%s5161_s13 + $0x3e0] sm:$0xff]  }
 0x186   : > { %4387 = vmatpush3.bf16.msra.mxu0 %v3642_v45  ;;  %v3712_v45 = vld [vmem:[%s5161_s13 + $0x368] sm:$0xff]  }
 0x187   : > { %4421 = vmatprep.subr.bf16.mxu0 %v3675_v46  ;;  %v3719_v46 = vld [vmem:[%s5161_s13 + $0x3a0] sm:$0xff]  }
 0x188   : > { %4419 = vmatpush3.bf16.msra.mxu1 %v3658_v48  ;;  %v3704_v48 = vld [vmem:[%s5161_s13 + $0x328] sm:$0xff]  }
 0x189   : > { %1966 = vmatmul.mubr.f32.vlgmr.msra.gmra.mrb[6].mxu0 %v5309_v10  ;;  %4453 = vmatprep.subr.bf16.mxu1 %v3691_v49  ;;  %v3696_v10 = vld [vmem:[%s5161_s13 + $0x2e8] sm:$0xff]   ;;  %v3713_v49 = vld [vmem:[%s5161_s13 + $0x370] sm:$0xff]  }
 0x18a   : > { %4423 = vmatpush3.bf16.msra.mxu0 %v3667_v51  ;;  %2105 = vmatprep.mubr.f32.mxu0 %v1684_v52  ;;  %v3729_v51 = vld [vmem:[%s5161_s13 + $0x3f0] sm:$0xff]  }
 0x18b   : > { %2036 = vmatmul.mubr.f32.vlgmr.msra.gmra.mrb[6].mxu1 %v5315_v14  ;;  %4425 = vmatprep.subr.bf16.mxu0 %v3676_v53  ;;  %v3673_v14 = vld [vmem:[%s5161_s13 + $0x230] sm:$0xff]  }
 0x18c   : > { %4455 = vmatpush3.bf16.msra.mxu1 %v3683_v54  ;;  %2175 = vmatprep.mubr.f32.mxu1 %v1685_v55  ;;  %v3705_v52 = vld [vmem:[%s5161_s13 + $0x330] sm:$0xff]   ;;  %v3714_v54 = vld [vmem:[%s5161_s13 + $0x378] sm:$0xff]  }
 0x18d   : > { %4457 = vmatprep.subr.bf16.mxu1 %v3692_v56  ;;  %v859_v53 = vld [vmem:[#allocation2 + $0x20] sm:$0xff]  ;;  %v3730_v56 = vld [vmem:[%s5161_s13 + $0x3f8] sm:$0xff]  }
 0x18e   : > { %4427 = vmatpush3.bf16.msra.mxu0 %v3668_v57  ;;  %v3721_v55 = vld [vmem:[%s5161_s13 + $0x3b0] sm:$0xff]   ;;  %v1703_v57 = vcombine.high %v859_v53, %v859_v53 }
 0x18f   : > { %4429 = vmatprep.subr.bf16.mxu0 %v3677_v58  ;;  %v3706_v58 = vld [vmem:[%s5161_s13 + $0x338] sm:$0xff]  }
 0x190   : > { %4459 = vmatpush3.bf16.msra.mxu1 %v3684_v59  ;;  %v3739_v59 = vld [vmem:[%s5161_s13 + $0x440] sm:$0xff]  }
 0x191   : > { %4461 = vmatprep.subr.bf16.mxu1 %v3693_v60  ;;  %v5437_v60 = vrot.slane %v859_v53, %v5304_v3  ;;  %v3775_v53 = vld [vmem:[%s5161_s13 + $0x560] sm:$0xff]  }
 0x192   : > { %4431 = vmatpush3.bf16.msra.mxu0 %v3669_v61  ;;  %v3722_v61 = vld [vmem:[%s5161_s13 + $0x3b8] sm:$0xff]  }
 0x193   : > { %4433 = vmatprep.subr.bf16.mxu0 %v3678_v62  ;;  %v3755_v62 = vld [vmem:[%s5161_s13 + $0x4c0] sm:$0xff]  }
 0x194   : > { %4463 = vmatpush3.bf16.msra.mxu1 %v3685_v63  ;;  %v5442_v63 = vrot.slane %v1703_v57, %v5304_v3  ;;  %v3776_v57 = vld [vmem:[%s5161_s13 + $0x568] sm:$0xff]  }
 0x195   : > { %4465 = vmatprep.subr.bf16.mxu1 %v3694_v0  ;;  %v3731_v0 = vld [vmem:[%s5161_s13 + $0x400] sm:$0xff]  }
 0x196   : > { %4435 = vmatpush3.bf16.msra.mxu0 %v3670_v1  ;;  %v1718_v1 = vcombine.high %v5437_v60, %v5437_v60 }
 0x197   : > { %4437 = vmatprep.subr.bf16.mxu0 %v3679_v4  ;;  %v3740_v4 = vld [vmem:[%s5161_s13 + $0x448] sm:$0xff]  }
 0x198   : > { %4467 = vmatpush3.bf16.msra.mxu1 %v3686_v5  ;;  %v3747_v5 = vld [vmem:[%s5161_s13 + $0x480] sm:$0xff]  }
 0x199   : > { %4469 = vmatprep.subr.bf16.mxu1 %v3695_v6  ;;  %v1719_v6 = vcombine.high %v5442_v63, %v5442_v63 }
 0x19a   : > { %4439 = vmatpush3.bf16.msra.mxu0 %v3671_v7  ;;  %v3756_v7 = vld [vmem:[%s5161_s13 + $0x4c8] sm:$0xff]  }
 0x19b   : > { %4441 = vmatprep.subr.bf16.mxu0 %v3680_v8  ;;  %v3732_v8 = vld [vmem:[%s5161_s13 + $0x408] sm:$0xff]  }
 0x19c   : > { %4471 = vmatpush3.bf16.msra.mxu1 %v3687_v9  ;;  %v3741_v9 = vld [vmem:[%s5161_s13 + $0x450] sm:$0xff]  }
 0x19d   : > { %4473 = vmatprep.subr.bf16.mxu1 %v3696_v10  ;;  %v3748_v10 = vld [vmem:[%s5161_s13 + $0x488] sm:$0xff]  }
 0x19e   : > { %4443 = vmatpush3.bf16.msra.mxu0 %v3672_v11  ;;  %v3757_v11 = vld [vmem:[%s5161_s13 + $0x4d0] sm:$0xff]  }
 0x19f   : > { %4445 = vmatprep.subr.bf16.mxu0 %v3681_v12  ;;  %v3733_v12 = vld [vmem:[%s5161_s13 + $0x410] sm:$0xff]  }
 0x1a0   : > { %4475 = vmatpush3.bf16.msra.mxu1 %v3688_v2  ;;  %v3742_v2 = vld [vmem:[%s5161_s13 + $0x458] sm:$0xff]  }
 0x1a1   : > { %4477 = vmatprep.subr.bf16.mxu1 %v3697_v13  ;;  %v3749_v13 = vld [vmem:[%s5161_s13 + $0x490] sm:$0xff]  }
 0x1a2   : > { %4447 = vmatpush3.bf16.msra.mxu0 %v3673_v14  ;;  %v3758_v14 = vld [vmem:[%s5161_s13 + $0x4d8] sm:$0xff]  }
 0x1a3   : > { %4449 = vmatprep.subr.bf16.mxu0 %v3682_v16  ;;  %v3743_v16 = vld [vmem:[%s5161_s13 + $0x460] sm:$0xff]  }
 0x1a4   : > { %4479 = vmatpush3.bf16.msra.mxu1 %v3689_v17  ;;  %v3750_v17 = vld [vmem:[%s5161_s13 + $0x498] sm:$0xff]  }
 0x1a5   : > { %4481 = vmatprep.subr.bf16.mxu1 %v3698_v18  ;;  %v3759_v18 = vld [vmem:[%s5161_s13 + $0x4e0] sm:$0xff]  }
 0x1a6   : > { %4451 = vmatpush3.bf16.msra.mxu0 %v3674_v20  ;;  %v3744_v20 = vld [vmem:[%s5161_s13 + $0x468] sm:$0xff]  }
 0x1a7   : > { %4485 = vmatprep.subr.bf16.mxu0 %v3707_v21  ;;  %v3751_v21 = vld [vmem:[%s5161_s13 + $0x4a0] sm:$0xff]  }
 0x1a8   : > { %4483 = vmatpush3.bf16.msra.mxu1 %v3690_v23  ;;  %v3736_v23 = vld [vmem:[%s5161_s13 + $0x428] sm:$0xff]  }
 0x1a9   : > { %2106 = vmatmul.mubr.f32.vlgmr.msra.gmra.mrb[8].mxu0 %v5349_v47  ;;  %4517 = vmatprep.subr.bf16.mxu1 %v3723_v24  ;;  %v3728_v47 = vld [vmem:[%s5161_s13 + $0x3e8] sm:$0xff]   ;;  %v3745_v24 = vld [vmem:[%s5161_s13 + $0x470] sm:$0xff]  }
 0x1aa   : > { %4487 = vmatpush3.bf16.msra.mxu0 %v3699_v26  ;;  %2245 = vmatprep.mubr.f32.mxu0 %v1701_v27  ;;  %v3761_v26 = vld [vmem:[%s5161_s13 + $0x4f0] sm:$0xff]  }
 0x1ab   : > { %2176 = vmatmul.mubr.f32.vlgmr.msra.gmra.mrb[8].mxu1 %v5354_v50  ;;  %4489 = vmatprep.subr.bf16.mxu0 %v3708_v28  ;;  %v3720_v50 = vld [vmem:[%s5161_s13 + $0x3a8] sm:$0xff]   ;;  %v3737_v27 = vld [vmem:[%s5161_s13 + $0x430] sm:$0xff]  }
 0x1ac   : > { %4519 = vmatpush3.bf16.msra.mxu1 %v3715_v29  ;;  %2315 = vmatprep.mubr.f32.mxu1 %v1702_v30  ;;  %v860_v28 = vld [vmem:[#allocation2 + $0x28] sm:$0xff] }
 0x1ad   : > { %4521 = vmatprep.subr.bf16.mxu1 %v3724_v31  ;;  %v3746_v29 = vld [vmem:[%s5161_s13 + $0x478] sm:$0xff]   ;;  %v3753_v30 = vld [vmem:[%s5161_s13 + $0x4b0] sm:$0xff]  }
 0x1ae   : > { %4491 = vmatpush3.bf16.msra.mxu0 %v3700_v32  ;;  %v3762_v31 = vld [vmem:[%s5161_s13 + $0x4f8] sm:$0xff]   ;;  %v1720_v32 = vcombine.high %v860_v28, %v860_v28 }
 0x1af   : > { %4493 = vmatprep.subr.bf16.mxu0 %v3709_v33  ;;  %v3738_v33 = vld [vmem:[%s5161_s13 + $0x438] sm:$0xff]  }
 0x1b0   : > { %4523 = vmatpush3.bf16.msra.mxu1 %v3716_v34  ;;  %v3771_v34 = vld [vmem:[%s5161_s13 + $0x540] sm:$0xff]  }
 0x1b1   : > { %4525 = vmatprep.subr.bf16.mxu1 %v3725_v35  ;;  %v5481_v35 = vrot.slane %v860_v28, %v5304_v3 }
 0x1b2   : > { %4495 = vmatpush3.bf16.msra.mxu0 %v3701_v36  ;;  %v3754_v36 = vld [vmem:[%s5161_s13 + $0x4b8] sm:$0xff]  }
 0x1b3   : > { %4497 = vmatprep.subr.bf16.mxu0 %v3710_v37  ;;  %v3787_v37 = vld [vmem:[%s5161_s13 + $0x5c0] sm:$0xff]  }
 0x1b4   : > { %4527 = vmatpush3.bf16.msra.mxu1 %v3717_v38  ;;  %v5486_v38 = vrot.slane %v1720_v32, %v5304_v3 }
 0x1b5   : > { %4529 = vmatprep.subr.bf16.mxu1 %v3726_v39  ;;  %v3763_v39 = vld [vmem:[%s5161_s13 + $0x500] sm:$0xff]  }
 0x1b6   : > { %4499 = vmatpush3.bf16.msra.mxu0 %v3702_v40  ;;  %v1735_v40 = vcombine.high %v5481_v35, %v5481_v35  ;;  %v1736_v3 = vcombine.high %v5486_v38, %v5486_v38 }
 0x1b7   : > { %4501 = vmatprep.subr.bf16.mxu0 %v3711_v41  ;;  %v3772_v41 = vld [vmem:[%s5161_s13 + $0x548] sm:$0xff]  }
 0x1b8   : > { %4531 = vmatpush3.bf16.msra.mxu1 %v3718_v42  ;;  %v3779_v42 = vld [vmem:[%s5161_s13 + $0x580] sm:$0xff]  }
 0x1b9   : > { %4533 = vmatprep.subr.bf16.mxu1 %v3727_v43  ;;  %v3788_v43 = vld [vmem:[%s5161_s13 + $0x5c8] sm:$0xff]  }
 0x1ba   : > { %4503 = vmatpush3.bf16.msra.mxu0 %v3703_v44  ;;  %v3764_v44 = vld [vmem:[%s5161_s13 + $0x508] sm:$0xff]  }
 0x1bb   : > { %4505 = vmatprep.subr.bf16.mxu0 %v3712_v45  ;;  %v3773_v45 = vld [vmem:[%s5161_s13 + $0x550] sm:$0xff]  }
 0x1bc   : > { %4535 = vmatpush3.bf16.msra.mxu1 %v3719_v46  ;;  %v3780_v46 = vld [vmem:[%s5161_s13 + $0x588] sm:$0xff]  }
 0x1bd   : > { %4537 = vmatprep.subr.bf16.mxu1 %v3728_v47  ;;  %v3789_v47 = vld [vmem:[%s5161_s13 + $0x5d0] sm:$0xff]  }
 0x1be   : > { %4507 = vmatpush3.bf16.msra.mxu0 %v3704_v48  ;;  %v3765_v48 = vld [vmem:[%s5161_s13 + $0x510] sm:$0xff]  }
 0x1bf   : > { %4509 = vmatprep.subr.bf16.mxu0 %v3713_v49  ;;  %v3774_v49 = vld [vmem:[%s5161_s13 + $0x558] sm:$0xff]  }
 0x1c0   : > { %4539 = vmatpush3.bf16.msra.mxu1 %v3720_v50  ;;  %v3781_v50 = vld [vmem:[%s5161_s13 + $0x590] sm:$0xff]  }
 0x1c1   : > { %4541 = vmatprep.subr.bf16.mxu1 %v3729_v51  ;;  %v3790_v51 = vld [vmem:[%s5161_s13 + $0x5d8] sm:$0xff]  }
 0x1c2   : > { %4511 = vmatpush3.bf16.msra.mxu0 %v3705_v52  ;;  %v3766_v52 = vld [vmem:[%s5161_s13 + $0x518] sm:$0xff]  }
 0x1c3   : > { %4513 = vmatprep.subr.bf16.mxu0 %v3714_v54  ;;  %v3782_v54 = vld [vmem:[%s5161_s13 + $0x598] sm:$0xff]  }
 0x1c4   : > { %4543 = vmatpush3.bf16.msra.mxu1 %v3721_v55  ;;  %v3791_v55 = vld [vmem:[%s5161_s13 + $0x5e0] sm:$0xff]  }
 0x1c5   : > { %4545 = vmatprep.subr.bf16.mxu1 %v3730_v56  ;;  %v3767_v56 = vld [vmem:[%s5161_s13 + $0x520] sm:$0xff]  }
 0x1c6   : > { %4515 = vmatpush3.bf16.msra.mxu0 %v3706_v58  ;;  %v3783_v58 = vld [vmem:[%s5161_s13 + $0x5a0] sm:$0xff]  }
 0x1c7   : > { %4549 = vmatprep.subr.bf16.mxu0 %v3739_v59  ;;  %v3792_v59 = vld [vmem:[%s5161_s13 + $0x5e8] sm:$0xff]  }
 0x1c8   : > { %4547 = vmatpush3.bf16.msra.mxu1 %v3722_v61  ;;  %v3777_v61 = vld [vmem:[%s5161_s13 + $0x570] sm:$0xff]  }
 0x1c9   : > { %2246 = vmatmul.mubr.f32.vlgmr.msra.gmra.mrb[10].mxu0 %v5393_v22  ;;  %4581 = vmatprep.subr.bf16.mxu1 %v3755_v62  ;;  %v3760_v22 = vld [vmem:[%s5161_s13 + $0x4e8] sm:$0xff]  }
 0x1ca   : > { %4551 = vmatpush3.bf16.msra.mxu0 %v3731_v0  ;;  %2385 = vmatprep.mubr.f32.mxu0 %v1718_v1  ;;  %v3784_v62 = vld [vmem:[%s5161_s13 + $0x5a8] sm:$0xff]   ;;  %v3769_v0 = vld [vmem:[%s5161_s13 + $0x530] sm:$0xff]   ;;  %v3778_v1 = vld [vmem:[%s5161_s13 + $0x578] sm:$0xff]  }
 0x1cb   : > { %2316 = vmatmul.mubr.f32.vlgmr.msra.gmra.mrb[10].mxu1 %v5398_v25  ;;  %4553 = vmatprep.subr.bf16.mxu0 %v3740_v4  ;;  %v3752_v25 = vld [vmem:[%s5161_s13 + $0x4a8] sm:$0xff]   ;;  %v3785_v4 = vld [vmem:[%s5161_s13 + $0x5b0] sm:$0xff]  }
 0x1cc   : > { %4583 = vmatpush3.bf16.msra.mxu1 %v3747_v5  ;;  %2455 = vmatprep.mubr.f32.mxu1 %v1719_v6  ;;  %v3794_v5 = vld [vmem:[%s5161_s13 + $0x5f8] sm:$0xff]  }
 0x1cd   : > { %4585 = vmatprep.subr.bf16.mxu1 %v3756_v7  ;;  %v3770_v6 = vld [vmem:[%s5161_s13 + $0x538] sm:$0xff]  }
 0x1ce   : > { %4555 = vmatpush3.bf16.msra.mxu0 %v3732_v8  ;;  %v3786_v7 = vld [vmem:[%s5161_s13 + $0x5b8] sm:$0xff]  }
 0x1cf   : > { %4557 = vmatprep.subr.bf16.mxu0 %v3741_v9 }
 0x1d0   : > { %4587 = vmatpush3.bf16.msra.mxu1 %v3748_v10 }
 0x1d1   : > { %4589 = vmatprep.subr.bf16.mxu1 %v3757_v11 }
 0x1d2   : > { %4559 = vmatpush3.bf16.msra.mxu0 %v3733_v12 }
 0x1d3   : > { %4561 = vmatprep.subr.bf16.mxu0 %v3742_v2 }
 0x1d4   : > { %4591 = vmatpush3.bf16.msra.mxu1 %v3749_v13 }
 0x1d5   : > { %4593 = vmatprep.subr.bf16.mxu1 %v3758_v14 }
 0x1d6   : > { %4563 = vmatpush3.bf16.msra.mxu0 %v3734_v15 }
 0x1d7   : > { %4565 = vmatprep.subr.bf16.mxu0 %v3743_v16 }
 0x1d8   : > { %4595 = vmatpush3.bf16.msra.mxu1 %v3750_v17 }
 0x1d9   : > { %4597 = vmatprep.subr.bf16.mxu1 %v3759_v18 }
 0x1da   : > { %4567 = vmatpush3.bf16.msra.mxu0 %v3735_v19 }
 0x1db   : > { %4569 = vmatprep.subr.bf16.mxu0 %v3744_v20 }
 0x1dc   : > { %4599 = vmatpush3.bf16.msra.mxu1 %v3751_v21 }
 0x1dd   : > { %4601 = vmatprep.subr.bf16.mxu1 %v3760_v22 }
 0x1de   : > { %4571 = vmatpush3.bf16.msra.mxu0 %v3736_v23 }
 0x1df   : > { %4573 = vmatprep.subr.bf16.mxu0 %v3745_v24 }
 0x1e0   : > { %4603 = vmatpush3.bf16.msra.mxu1 %v3752_v25 }
 0x1e1   : > { %4605 = vmatprep.subr.bf16.mxu1 %v3761_v26 }
 0x1e2   : > { %4575 = vmatpush3.bf16.msra.mxu0 %v3737_v27 }
 0x1e3   : > { %4577 = vmatprep.subr.bf16.mxu0 %v3746_v29 }
 0x1e4   : > { %4607 = vmatpush3.bf16.msra.mxu1 %v3753_v30 }
 0x1e5   : > { %4609 = vmatprep.subr.bf16.mxu1 %v3762_v31 }
 0x1e6   : > { %4579 = vmatpush3.bf16.msra.mxu0 %v3738_v33 }
 0x1e7   : > { %4613 = vmatprep.subr.bf16.mxu0 %v3771_v34 }
 0x1e8   : > { %4611 = vmatpush3.bf16.msra.mxu1 %v3754_v36 }
 0x1e9   : > { %2386 = vmatmul.mubr.f32.vlgmr.msra.gmra.mrb[12].mxu0 %v5437_v60  ;;  %4645 = vmatprep.subr.bf16.mxu1 %v3787_v37  ;;  %v3768_v60 = vld [vmem:[%s5161_s13 + $0x528] sm:$0xff]  }
 0x1ea   : > { %4615 = vmatpush3.bf16.msra.mxu0 %v3763_v39  ;;  %2525 = vmatprep.mubr.f32.mxu0 %v1735_v40 }
 0x1eb   : > { %2456 = vmatmul.mubr.f32.vlgmr.msra.gmra.mrb[12].mxu1 %v5442_v63  ;;  %4617 = vmatprep.subr.bf16.mxu0 %v3772_v41  ;;  %v3793_v63 = vld [vmem:[%s5161_s13 + $0x5f0] sm:$0xff]  }
 0x1ec   : > { %4647 = vmatpush3.bf16.msra.mxu1 %v3779_v42  ;;  %2595 = vmatprep.mubr.f32.mxu1 %v1736_v3 }
 0x1ed   : > { %4649 = vmatprep.subr.bf16.mxu1 %v3788_v43 }
 0x1ee   : > { %4619 = vmatpush3.bf16.msra.mxu0 %v3764_v44 }
 0x1ef   : > { %4621 = vmatprep.subr.bf16.mxu0 %v3773_v45 }
 0x1f0   : > { %4651 = vmatpush3.bf16.msra.mxu1 %v3780_v46 }
 0x1f1   : > { %4653 = vmatprep.subr.bf16.mxu1 %v3789_v47 }
 0x1f2   : > { %4623 = vmatpush3.bf16.msra.mxu0 %v3765_v48 }
 0x1f3   : > { %4625 = vmatprep.subr.bf16.mxu0 %v3774_v49 }
 0x1f4   : > { %4655 = vmatpush3.bf16.msra.mxu1 %v3781_v50 }
 0x1f5   : > { %4657 = vmatprep.subr.bf16.mxu1 %v3790_v51 }
 0x1f6   : > { %4627 = vmatpush3.bf16.msra.mxu0 %v3766_v52  ;;  %v854_v52 = vld [vmem:[#allocation3] sm:$0x3] }
 0x1f7   : > { %4629 = vmatprep.subr.bf16.mxu0 %v3775_v53 }
 0x1f8   : > { %4659 = vmatpush3.bf16.msra.mxu1 %v3782_v54 }
 0x1f9   : > { %4661 = vmatprep.subr.bf16.mxu1 %v3791_v55  ;;  %v2617_v55 = vld [vmem:[%s5616_s5] sm:$0xff] (!%p2828_p6) }
 0x1fa   : > { %4631 = vmatpush3.bf16.msra.mxu0 %v3767_v56  ;;  %v2618_v56 = vld [vmem:[%s5616_s5 + $0x8] sm:$0xff] (!%p2828_p6) }
 0x1fb   : > { %4633 = vmatprep.subr.bf16.mxu0 %v3776_v57  ;;  %v2619_v57 = vld [vmem:[%s5616_s5 + $0x10] sm:$0xff] (!%p2828_p6) }
 0x1fc   : > { %4663 = vmatpush3.bf16.msra.mxu1 %v3783_v58  ;;  %v4956_v58 = vmov (!%p2828_p6), 0.0|0.0  }
 0x1fd   : > { %4665 = vmatprep.subr.bf16.mxu1 %v3792_v59  ;;  %v4677_v59 = vpack.c.bf16 (!%p2828_p6), %v2618_v56, %v2617_v55 }
 0x1fe   : > { %4635 = vmatpush3.bf16.msra.mxu0 %v3768_v60  ;;  %v2620_v60 = vld [vmem:[%s5616_s5 + $0x18] sm:$0xff] (!%p2828_p6) }
 0x1ff   : > { %4637 = vmatprep.subr.bf16.mxu0 %v3777_v61  ;;  %v4958_v61 = vmov (!%p2828_p6), 0.0  }
 0x200   : > { %4667 = vmatpush3.bf16.msra.mxu1 %v3784_v62  ;;  %v4680_v62 = vpack.c.bf16 (!%p2828_p6), %v2620_v60, %v2619_v57 }
 0x201   : > { %4669 = vmatprep.subr.bf16.mxu1 %v3793_v63  ;;  %v2621_v63 = vld [vmem:[%s5616_s5 + $0x20] sm:$0xff] (!%p2828_p6) }
 0x202   : > { %4639 = vmatpush3.bf16.msra.mxu0 %v3769_v0  ;;  %v2622_v0 = vld [vmem:[%s5616_s5 + $0x28] sm:$0xff] (!%p2828_p6) }
 0x203   : > { %4641 = vmatprep.subr.bf16.mxu0 %v3778_v1  ;;  %v4683_v1 = vpack.c.bf16 (!%p2828_p6), %v2622_v0, %v2621_v63 }
 0x204   : > { %4671 = vmatpush3.bf16.msra.mxu1 %v3785_v4  ;;  %v2623_v4 = vld [vmem:[%s5616_s5 + $0x30] sm:$0xff] (!%p2828_p6) }
 0x205   : > { %4673 = vmatprep.subr.bf16.mxu1 %v3794_v5  ;;  %v2624_v5 = vld [vmem:[%s5616_s5 + $0x38] sm:$0xff] (!%p2828_p6) }
 0x206   : > { %4643 = vmatpush3.bf16.msra.mxu0 %v3770_v6  ;;  %v4686_v6 = vpack.c.bf16 (!%p2828_p6), %v2624_v5, %v2623_v4 }
 0x207   : > { %4676 = vmatprep.subr.bf16.mxu0 (!%p2828_p6), %v4956_v58 }
 0x208   : > { %4675 = vmatpush3.bf16.msra.mxu1 %v3786_v7  ;;  %v2625_v7 = vld [vmem:[%s5616_s5 + $0x40] sm:$0xff] (!%p2828_p6) }
 0x209   : > { %2526 = vmatmul.mubr.f32.vlgmr.msra.gmra.mrb[14].mxu0 %v5481_v35 }
 0x20a   : > { %4274 = vmatprep.mubr.msk.f32.mxu0 (!%p2828_p6), %vm4957_vm3, %v4958_v61  ;;  %4678 = vmatpush3.bf16.msra.mxu0 (!%p2828_p6), %v4677_v59 }
 0x20b   : > { %2596 = vmatmul.mubr.f32.vlgmr.msra.gmra.mrb[14].mxu1 %v5486_v38  ;;  %4679 = vmatprep.subr.bf16.mxu0 (!%p2828_p6), %v4956_v58 }
 0x20e   : > { %4681 = vmatpush3.bf16.msra.mxu0 (!%p2828_p6), %v4680_v62 }
 0x20f   : > { %4682 = vmatprep.subr.bf16.mxu0 (!%p2828_p6), %v4956_v58 }
 0x212   : > { %4684 = vmatpush3.bf16.msra.mxu0 (!%p2828_p6), %v4683_v1 }
 0x213   : > { %4685 = vmatprep.subr.bf16.mxu0 (!%p2828_p6), %v4956_v58 }
 0x216   : > { %4687 = vmatpush3.bf16.msra.mxu0 (!%p2828_p6), %v4686_v6 }
 0x217   : > { %4688 = vmatprep.subr.bf16.mxu0 (!%p2828_p6), %v4956_v58 }
 0x23c   : > { %v3830_v8 = vpop.f32.mrb[4].mxu0 }
 0x23d   : > { %v3831_v9 = vpop.f32.mrb[5].mxu0 }
 0x23e   : > { %v3832_v10 = vadd.f32 %v3831_v9, %v3830_v8  ;;  %v3865_v11 = vpop.f32.mrb[4].mxu1  ;;  %v2626_v8 = vld [vmem:[%s5616_s5 + $0x48] sm:$0xff] (!%p2828_p6) }
 0x23f   : > { %v3866_v12 = vpop.f32.mrb[5].mxu1  ;;  %v4689_v9 = vpack.c.bf16 (!%p2828_p6), %v2626_v8, %v2625_v7 }
 0x240   : > { %v3867_v2 = vadd.f32 %v3866_v12, %v3865_v11  ;;  %v2628_v11 = vld [vmem:[%s5616_s5 + $0x58] sm:$0xff] (!%p2828_p6) }
 0x241   : > { %4690 = vmatpush3.bf16.msra.mxu0 (!%p2828_p6), %v4689_v9 }
 0x242   : > { %v1898_v13 = vadd.f32 %v3867_v2, %v3832_v10  ;;  %v2627_v10 = vld [vmem:[%s5616_s5 + $0x50] sm:$0xff] (!%p2828_p6)  ;;  %4691 = vmatprep.subr.bf16.mxu0 (!%p2828_p6), %v4956_v58  ;;  %v2629_v2 = vld [vmem:[%s5616_s5 + $0x60] sm:$0xff] (!%p2828_p6) }
 0x243   : > { %v4692_v12 = vpack.c.bf16 (!%p2828_p6), %v2628_v11, %v2627_v10 }
 0x245   : > { %4693 = vmatpush3.bf16.msra.mxu0 (!%p2828_p6), %v4692_v12 }
 0x246   : > { %4694 = vmatprep.subr.bf16.mxu0 (!%p2828_p6), %v4956_v58 }
 0x25c   : > { %v3900_v14 = vpop.f32.mrb[6].mxu0 }
 0x25d   : > { %v3901_v15 = vpop.f32.mrb[7].mxu0 }
 0x25e   : > { %v3902_v16 = vadd.f32 %v3901_v15, %v3900_v14  ;;  %v3935_v17 = vpop.f32.mrb[6].mxu1 }
 0x25f   : > { %v3936_v18 = vpop.f32.mrb[7].mxu1 }
 0x260   : > { %v1968_v19 = vadd.f32 %v3902_v16, %v1898_v13  ;;  %v3937_v20 = vadd.f32 %v3936_v18, %v3935_v17  ;;  %v2630_v13 = vld [vmem:[%s5616_s5 + $0x68] sm:$0xff] (!%p2828_p6)  ;;  %v2829_v16 = vld [vmem:[#allocation7] ss:$0 sm:$0xff] (!%p2828_p6)  ;;  %v2632_v18 = vld [vmem:[%s5616_s5 + $0x78] sm:$0xff] (!%p2828_p6) }
 0x261   : > { %v4695_v14 = vpack.c.bf16 (!%p2828_p6), %v2630_v13, %v2629_v2  ;;  %v2631_v17 = vld [vmem:[%s5616_s5 + $0x70] sm:$0xff] (!%p2828_p6) }
 0x262   : > { %v2038_v21 = vadd.f32 %v3937_v20, %v1968_v19  ;;  %v4698_v20 = vpack.c.bf16 (!%p2828_p6), %v2632_v18, %v2631_v17 }
 0x263   : > { %4696 = vmatpush3.bf16.msra.mxu0 (!%p2828_p6), %v4695_v14 }
 0x264   : > { %4697 = vmatprep.subr.bf16.mxu0 (!%p2828_p6), %v4956_v58 }
 0x267   : > { %4699 = vmatpush3.bf16.msra.mxu0 (!%p2828_p6), %v4698_v20 }
 0x27c   : > { %v3970_v22 = vpop.f32.mrb[8].mxu0 }
 0x27d   : > { %v3971_v23 = vpop.f32.mrb[9].mxu0 }
 0x27e   : > { %v3972_v24 = vadd.f32 %v3971_v23, %v3970_v22  ;;  %v4005_v25 = vpop.f32.mrb[8].mxu1  ;;  %v2830_v22 = vld [vmem:[#allocation9] ss:$0 sm:$0xff] (!%p2828_p6) }
 0x27f   : > { %v4006_v26 = vpop.f32.mrb[9].mxu1 }
 0x280   : > { %v2108_v27 = vadd.f32 %v3972_v24, %v2038_v21  ;;  %v4007_v28 = vadd.f32 %v4006_v26, %v4005_v25 }
 0x282   : > { %v2178_v29 = vadd.f32 %v4007_v28, %v2108_v27 }
 0x29c   : > { %v4040_v30 = vpop.f32.mrb[10].mxu0 }
 0x29d   : > { %v4041_v31 = vpop.f32.mrb[11].mxu0 }
 0x29e   : > { %v4042_v32 = vadd.f32 %v4041_v31, %v4040_v30  ;;  %v4075_v33 = vpop.f32.mrb[10].mxu1 }
 0x29f   : > { %v4076_v34 = vpop.f32.mrb[11].mxu1 }
 0x2a0   : > { %v2248_v35 = vadd.f32 %v4042_v32, %v2178_v29  ;;  %v4077_v36 = vadd.f32 %v4076_v34, %v4075_v33 }
 0x2a2   : > { %v2318_v37 = vadd.f32 %v4077_v36, %v2248_v35 }
 0x2bc   : > { %v4110_v38 = vpop.f32.mrb[12].mxu0 }
 0x2bd   : > { %v4111_v39 = vpop.f32.mrb[13].mxu0 }
 0x2be   : > { %v4112_v40 = vadd.f32 %v4111_v39, %v4110_v38  ;;  %v4145_v41 = vpop.f32.mrb[12].mxu1 }
 0x2bf   : > { %v4146_v42 = vpop.f32.mrb[13].mxu1 }
 0x2c0   : > { %v2388_v3 = vadd.f32 %v4112_v40, %v2318_v37  ;;  %v4147_v43 = vadd.f32 %v4146_v42, %v4145_v41 }
 0x2c2   : > { %v2458_v44 = vadd.f32 %v4147_v43, %v2388_v3 }
 0x2dc   : > { %v4180_v45 = vpop.f32.mrb[14].mxu0 }
 0x2dd   : > { %v4181_v46 = vpop.f32.mrb[15].mxu0 }
 0x2de   : > { %v4182_v47 = vadd.f32 %v4181_v46, %v4180_v45  ;;  %v4215_v48 = vpop.f32.mrb[14].mxu1 }
 0x2df   : > { %v4216_v49 = vpop.f32.mrb[15].mxu1 }
 0x2e0   : > { %v2528_v50 = vadd.f32 %v4182_v47, %v2458_v44  ;;  %v4217_v51 = vadd.f32 %v4216_v49, %v4215_v48  ;;  %2606 = sbr.rel (%p2828_p6) target bundleno = 969 (0x3c9), region = 68 }
 0x2e2   : > { %v2598_v53 = vadd.f32 %v4217_v51, %v2528_v50 }
 0x2e4   : > { %v2601_v54 = vadd.f32 %v2598_v53, %v854_v52 }
 0x2e6   : > { %2602 = vst [vmem:[#allocation3] sm:$0x3] %v2601_v54 }
 0x2ed   : > { %v2607_v15 = vld [vmem:[#allocation3] sm:$0x3] }
 0x2ee   : > { %v2615_v19 = vadd.f32 %v2829_v16, %v2607_v15 }
 0x2f0   : > { %v2616_v21 = vmax.f32 %v2615_v19, 0.0 }
 0x2f2   : > { %4275 = vmatmul.mubr.f32.vlgmr.msra.gmra.mrb[0].mxu0 %v2616_v21 }
 0x3c5   : > { %v2706_v23 = vpop.f32.mrb[0].mxu0 }
 0x3c6   : > { %v2707_v24 = vadd.f32 %v2830_v22, %v2706_v23  ;;  %v4276_v25 = vpop.f32.mrb[1].mxu0 }
 0x3c8   : > { %2711 = vst.msk [vmem:[#allocation10] sm:$0x3] %vm2710_vm4, %v2707_v24 }
 0x3c9 PF: > { %p4732_p7 = scmp.eq.s32.totalorder %s5019_s28, 3  ;;  %s4959_s14 = smov [#allocation10]  }
 0x3ca   : > { %s2719_s12 = sshll.u32 %s4959_s14, 4  ;;  %s2720_s12 = int_to_ptr.vmem [resolvable:$true] %s2719_s12 }
 0x3cb   : > { %s4874_s18 = scalar_lea.vmem %s2720_s12, 32  ;;  %p4881_p5 = scmp.lt.s32.totalorder %s2720_s12, %s2720_s12 }
 0x3cc   : > { %p4875_p11 = scmp.ne.s32.totalorder %s2720_s12, %s4874_s18  ;;  %p4882_p9 = scmp.lt.s32.totalorder %s4874_s18, %s4874_s18 }
 0x3ce   : > { %p4876_p12 = pnand %p4875_p11, %p4732_p7  ;;  %p4883_p10 = por %p4882_p9, %p4881_p5 }
 0x3d0   : > { %p4877_p13 = pneg %p4876_p12 }
 0x3d2   : > { %p4884_p1 = pnand %p4883_p10, %p4877_p13 }
 0x3d4   : > { %4887 = shalt.err (!%p4884_p1)
}
 0x3d5   : > { %s4888_s11 = scalar_lea.hbm %s5618_s7, 32 }
 0x3d6   : > { %p4889_p8 = scmp.ne.s32.totalorder %s5618_s7, %s4888_s11  ;;  %p4894_p3 = scmp.lt.u32.totalorder %s4888_s11, %s5618_s7 }
 0x3d8   : > { %p4890_p0 = pnand %p4889_p8, %p4732_p7 }
 0x3da   : > { %p4891_p2 = pneg %p4890_p0 }
 0x3dc   : > { %p4896_p4 = pnand %p4894_p3, %p4891_p2 }
 0x3de   : > { %4899 = shalt.err (!%p4896_p4)
}
 0x3df   : > { %4713 = dma.vmem_to_hbm [thread:$0]  (%p4732_p7), %s2720_s12, 32, %s5618_s7, [#allocation6]  }
 0x3e0   : > { %4925 = dma.done.wait (%p4732_p7), [#allocation6], 32  }
 0x3e1   : > { %4927 = vsyncadd (%p4732_p7), [#allocation6], 4294967264 }
 0x3e2 PF: > { %p19_p6 = scmp.ge.s32.totalorder %s5022_s29, 6   ;;  %s5636_s24 = smov %s4934_s25 }
 0x3e3   : > { %s5637_s25 = smov %s4938_s26  ;;  %s5638_s26 = smov %s5032_s9 }
 0x3e4   : > { %s5639_s27 = smov %s5022_s29  ;;  %21 = sbr.rel (!%p19_p6) target bundleno = 5 (0x5), region = 122 }
 0x3eb   :  { %2732 = vsyncpa [#allocation5], 1 }
 0x3ec   :  { %2734 = vsyncpa [#allocation5 + $0x1], 1 }
 0x3ed   :  { %2735 = vsyncpa [#allocation8], 1 }
 0x3ee   :  { %2736 = vsyncpa [#allocation6], 1 }
 0x3ef   :  { %2738 = vsyncpa [#allocation6 + $0x1], 1 }

</bundles_post_ra>
